<compile_context>
chip_gen: v6e
topology: v6e:2x2x1
jax: 0.10.0
libtpu: 0.0.40
codegen_flags: <defaults>
</compile_context>

<pallas_src>
import math
import jax
import jax.numpy as jnp
from jax.experimental import pallas as pl
from jax.experimental.pallas import tpu as pltpu


# ----------------------------------------------------------------------------
# Pallas kernel
# ----------------------------------------------------------------------------
def _make_lstm_kernel(*, num_layers, batch, hidden, seq_len, input_size, out_size):
    L, B, H, T, I, OUT = num_layers, batch, hidden, seq_len, input_size, out_size

    def kernel(*refs):
        # refs = [x_tbi, (w_ih_T, w_hh_T, b) * L, w_fc_T, b_fc, out]
        x_ref = refs[0]
        layer_refs = [(refs[1 + 3 * l], refs[2 + 3 * l], refs[3 + 3 * l])
                      for l in range(L)]
        w_fc_ref = refs[1 + 3 * L]
        b_fc_ref = refs[2 + 3 * L]
        out_ref = refs[3 + 3 * L]

        x = x_ref[...]                      # (T, B, I), time-major, resident in VMEM
        layer_in = x.reshape(T * B, I)      # t-major rows: row index = t*B + b

        # Hoist weight/bias loads out of the unrolled loops (no CSE of ref loads).
        ws = [(w_ih_ref[...], w_hh_ref[...], b_ref[...])
              for (w_ih_ref, w_hh_ref, b_ref) in layer_refs]

        # Hoisted single-tanh activation constants.
        #   g lanes (tanh):      pre=1.0, post: 1.0*t + 0.0
        #   i/f/o lanes (sigm):  pre=0.5, post: 0.5*t + 0.5   (sigmoid(x)=0.5*tanh(x/2)+0.5)
        lane = jax.lax.broadcasted_iota(jnp.int32, (B, 4 * H), 1)
        is_g = (lane >= 2 * H) & (lane < 3 * H)
        half = jnp.float32(0.5)
        one = jnp.float32(1.0)
        zero = jnp.float32(0.0)
        pre_scale = jnp.where(is_g, one, half)     # (B, 4H)
        post_scale = pre_scale                      # same 1.0 / 0.5 pattern
        post_shift = jnp.where(is_g, zero, half)    # (B, 4H)

        h_finals = []
        for l in range(L):
            w_ih_T, w_hh_T, b = ws[l]   # (in,4H), (H,4H), (1,4H)

            # Batched input projection for the whole sequence: one MXU call per layer,
            # bias folded in here so the recurrence carries no broadcast/add.
            x_proj = jnp.dot(layer_in, w_ih_T,
                             preferred_element_type=jnp.float32) + b   # (T*B, 4H)

            h = jnp.zeros((B, H), jnp.float32)
            c = jnp.zeros((B, H), jnp.float32)
            hs = []
            for t in range(T):
                # Only the small K=H recurrent matmul sits on the serial chain.
                gates = x_proj[t * B:(t + 1) * B, :] + jnp.dot(
                    h, w_hh_T, preferred_element_type=jnp.float32)     # (B, 4H)
                act = jnp.tanh(gates * pre_scale)
                act = act * post_scale + post_shift
                i_g = act[:, 0 * H:1 * H]
                f_g = act[:, 1 * H:2 * H]
                g_g = act[:, 2 * H:3 * H]
                o_g = act[:, 3 * H:4 * H]
                c = f_g * c + i_g * g_g
                h = o_g * jnp.tanh(c)
                hs.append(h)
            h_finals.append(h)
            # Next layer's input: the full hidden sequence, t-major (sublane concat).
            layer_in = jnp.concatenate(hs, axis=0)                     # (T*B, H)

        # Fused FC epilogue: one stack, one MXU call, one store.
        h_stack = jnp.concatenate(h_finals, axis=0)                    # (L*B, H)
        out = jnp.dot(h_stack, w_fc_ref[...],
                      preferred_element_type=jnp.float32) + b_fc_ref[...]
        out_ref[...] = out.astype(out_ref.dtype)

    return kernel


# ----------------------------------------------------------------------------
# Wrapper
# ----------------------------------------------------------------------------
def lstm_forward(x, params, *, num_layers, hidden, out_size):
    """x: (B, T, input_size) float32 (batch_first, matching the PyTorch module)."""
    B, T, I = x.shape
    H = hidden

    # Time-major layout so per-step slabs / stacked layer inputs are sublane slices.
    x_tbi = jnp.transpose(x, (1, 0, 2))                    # (T, B, I)

    inputs = [x_tbi]
    for l in range(num_layers):
        w_ih, w_hh, b_ih, b_hh = params["layers"][l]
        inputs += [
            jnp.asarray(w_ih.T),                           # (in_dim, 4H)
            jnp.asarray(w_hh.T),                           # (H, 4H)
            (b_ih + b_hh).reshape(1, 4 * H),               # pre-summed bias
        ]
    w_fc, b_fc = params["fc"]
    inputs += [jnp.asarray(w_fc.T), b_fc.reshape(1, out_size)]

    kernel = _make_lstm_kernel(num_layers=num_layers, batch=B, hidden=H,
                               seq_len=T, input_size=I, out_size=out_size)
    vmem = pl.BlockSpec(memory_space=pltpu.MemorySpace.VMEM)

    out = pl.pallas_call(
        kernel,
        out_shape=jax.ShapeDtypeStruct((num_layers * B, out_size), jnp.float32),
        in_specs=[vmem] * len(inputs),
        out_specs=vmem,
    )(*inputs)
    return out


# ----------------------------------------------------------------------------
# Pure-JAX reference (for correctness check)
# ----------------------------------------------------------------------------
def lstm_ref(x, params, *, num_layers, hidden):
    B, T, I = x.shape
    inp = x
    h_finals = []
    for l in range(num_layers):
        w_ih, w_hh, b_ih, b_hh = params["layers"][l]

        def step(carry, x_t):
            h, c = carry
            gates = x_t @ w_ih.T + h @ w_hh.T + b_ih + b_hh
            i = jax.nn.sigmoid(gates[:, :hidden])
            f = jax.nn.sigmoid(gates[:, hidden:2 * hidden])
            g = jnp.tanh(gates[:, 2 * hidden:3 * hidden])
            o = jax.nn.sigmoid(gates[:, 3 * hidden:])
            c = f * c + i * g
            h = o * jnp.tanh(c)
            return (h, c), h

        h0 = jnp.zeros((B, hidden), jnp.float32)
        c0 = jnp.zeros((B, hidden), jnp.float32)
        (h_f, _), hs = jax.lax.scan(step, (h0, c0), jnp.transpose(inp, (1, 0, 2)))
        h_finals.append(h_f)
        inp = jnp.transpose(hs, (1, 0, 2))
    h_out = jnp.concatenate(h_finals, axis=0)  # (num_layers*B, H)
    w_fc, b_fc = params["fc"]
    return h_out @ w_fc.T + b_fc


# ----------------------------------------------------------------------------
# Deterministic parameter init (PyTorch-style U(-1/sqrt(H), 1/sqrt(H)))
# ----------------------------------------------------------------------------
def init_params(key, *, num_layers, input_size, hidden, out_size):
    k = 1.0 / math.sqrt(hidden)
    layers = []
    for l in range(num_layers):
        in_dim = input_size if l == 0 else hidden
        key, k1, k2, k3, k4 = jax.random.split(key, 5)
        layers.append((
            jax.random.uniform(k1, (4 * hidden, in_dim), jnp.float32, -k, k),   # w_ih
            jax.random.uniform(k2, (4 * hidden, hidden), jnp.float32, -k, k),   # w_hh
            jax.random.uniform(k3, (4 * hidden,), jnp.float32, -k, k),          # b_ih
            jax.random.uniform(k4, (4 * hidden,), jnp.float32, -k, k),          # b_hh
        ))
    key, k5, k6 = jax.random.split(key, 3)
    fc = (
        jax.random.uniform(k5, (out_size, hidden), jnp.float32, -k, k),         # fc weight
        jax.random.uniform(k6, (out_size,), jnp.float32, -k, k),                # fc bias
    )
    return {"layers": layers, "fc": fc}


if __name__ == "__main__":
    # args: input_size=16, hidden_size=32, num_layers=2, pred_length=4
    B, T, I, H, L, OUT = 2, 8, 16, 32, 2, 4

    key = jax.random.PRNGKey(0)
    key, kx = jax.random.split(key)
    x = jax.random.normal(kx, (B, T, I), jnp.float32)

    params = init_params(key, num_layers=L, input_size=I, hidden=H, out_size=OUT)

    out = lstm_forward(x, params, num_layers=L, hidden=H, out_size=OUT)
    out = jax.block_until_ready(out)

    ref = jax.block_until_ready(lstm_ref(x, params, num_layers=L, hidden=H))

    assert out.shape == (L * B, OUT), out.shape
    assert jnp.allclose(out, ref, atol=1e-4, rtol=1e-4), (
        f"max err {jnp.max(jnp.abs(out - ref))}")

    print("KERNEL_OK")
</pallas_src>

<mosaic_0001>
module attributes {stable_mosaic.version = 11 : i64} {
  func.func @kernel(%arg0: memref<8x2x16xf32, #tpu.memory_space<vmem>>, %arg1: memref<16x128xf32, #tpu.memory_space<vmem>>, %arg2: memref<32x128xf32, #tpu.memory_space<vmem>>, %arg3: memref<1x128xf32, #tpu.memory_space<vmem>>, %arg4: memref<32x128xf32, #tpu.memory_space<vmem>>, %arg5: memref<32x128xf32, #tpu.memory_space<vmem>>, %arg6: memref<1x128xf32, #tpu.memory_space<vmem>>, %arg7: memref<32x4xf32, #tpu.memory_space<vmem>>, %arg8: memref<1x4xf32, #tpu.memory_space<vmem>>, %arg9: memref<4x4xf32, #tpu.memory_space<vmem>>) attributes {dimension_semantics = [], scalar_prefetch = 0 : i64, scratch_operands = 0 : i64, tpu.core_type = #tpu.core_type<tc>} {
    %c0 = arith.constant 0 : index
    %c0_0 = arith.constant 0 : index
    %c0_1 = arith.constant 0 : index
    %0 = vector.load %arg0[%c0, %c0_0, %c0_1] : memref<8x2x16xf32, #tpu.memory_space<vmem>>, vector<8x2x16xf32>
    %1 = vector.shape_cast %0 : vector<8x2x16xf32> to vector<16x16xf32>
    %c0_2 = arith.constant 0 : index
    %c0_3 = arith.constant 0 : index
    %2 = vector.load %arg1[%c0_2, %c0_3] : memref<16x128xf32, #tpu.memory_space<vmem>>, vector<16x128xf32>
    %c0_4 = arith.constant 0 : index
    %c0_5 = arith.constant 0 : index
    %3 = vector.load %arg2[%c0_4, %c0_5] : memref<32x128xf32, #tpu.memory_space<vmem>>, vector<32x128xf32>
    %c0_6 = arith.constant 0 : index
    %c0_7 = arith.constant 0 : index
    %4 = vector.load %arg3[%c0_6, %c0_7] : memref<1x128xf32, #tpu.memory_space<vmem>>, vector<1x128xf32>
    %c0_8 = arith.constant 0 : index
    %c0_9 = arith.constant 0 : index
    %5 = vector.load %arg4[%c0_8, %c0_9] : memref<32x128xf32, #tpu.memory_space<vmem>>, vector<32x128xf32>
    %c0_10 = arith.constant 0 : index
    %c0_11 = arith.constant 0 : index
    %6 = vector.load %arg5[%c0_10, %c0_11] : memref<32x128xf32, #tpu.memory_space<vmem>>, vector<32x128xf32>
    %c0_12 = arith.constant 0 : index
    %c0_13 = arith.constant 0 : index
    %7 = vector.load %arg6[%c0_12, %c0_13] : memref<1x128xf32, #tpu.memory_space<vmem>>, vector<1x128xf32>
    %8 = tpu.iota {dimensions = array<i32: 1>} : vector<2x128xi32>
    %c64_i32 = arith.constant 64 : i32
    %9 = vector.broadcast %c64_i32 : i32 to vector<2x128xi32>
    %10 = arith.cmpi sge, %8, %9 : vector<2x128xi32>
    %c96_i32 = arith.constant 96 : i32
    %11 = vector.broadcast %c96_i32 : i32 to vector<2x128xi32>
    %12 = arith.cmpi slt, %8, %11 : vector<2x128xi32>
    %13 = arith.andi %10, %12 : vector<2x128xi1>
    %cst = arith.constant 1.000000e+00 : f32
    %cst_14 = arith.constant 5.000000e-01 : f32
    %14 = vector.broadcast %cst : f32 to vector<2x128xf32>
    %15 = vector.broadcast %cst_14 : f32 to vector<2x128xf32>
    %16 = arith.select %13, %14, %15 : vector<2x128xi1>, vector<2x128xf32>
    %cst_15 = arith.constant 0.000000e+00 : f32
    %cst_16 = arith.constant 5.000000e-01 : f32
    %17 = vector.broadcast %cst_15 : f32 to vector<2x128xf32>
    %18 = vector.broadcast %cst_16 : f32 to vector<2x128xf32>
    %19 = arith.select %13, %17, %18 : vector<2x128xi1>, vector<2x128xf32>
    %cst_17 = arith.constant dense<0.000000e+00> : vector<16x128xf32>
    %20 = tpu.matmul %1, %2, %cst_17 {dimension_numbers = #tpu.dot_dimension_numbers<[1], [0], [0], [1], [0, 0, 1, 1], [], []>} : vector<16x16xf32>, vector<16x128xf32>, vector<16x128xf32> -> vector<16x128xf32>
    %21 = vector.broadcast %4 : vector<1x128xf32> to vector<16x128xf32>
    %22 = arith.addf %20, %21 : vector<16x128xf32>
    %cst_18 = arith.constant 0.000000e+00 : f32
    %23 = vector.broadcast %cst_18 : f32 to vector<2x32xf32>
    %cst_19 = arith.constant 0.000000e+00 : f32
    %24 = vector.broadcast %cst_19 : f32 to vector<2x32xf32>
    %25 = vector.extract_strided_slice %22 {offsets = [0, 0], sizes = [2, 128], strides = [1, 1]} : vector<16x128xf32> to vector<2x128xf32>
    %cst_20 = arith.constant dense<0.000000e+00> : vector<2x128xf32>
    %26 = tpu.matmul %23, %3, %cst_20 {dimension_numbers = #tpu.dot_dimension_numbers<[1], [0], [0], [1], [0, 0, 1, 1], [], []>} : vector<2x32xf32>, vector<32x128xf32>, vector<2x128xf32> -> vector<2x128xf32>
    %27 = arith.addf %25, %26 : vector<2x128xf32>
    %28 = arith.mulf %27, %16 : vector<2x128xf32>
    %29 = math.tanh %28 : vector<2x128xf32>
    %30 = arith.mulf %29, %16 : vector<2x128xf32>
    %31 = arith.addf %30, %19 : vector<2x128xf32>
    %32 = vector.extract_strided_slice %31 {offsets = [0, 0], sizes = [2, 32], strides = [1, 1]} : vector<2x128xf32> to vector<2x32xf32>
    %33 = vector.extract_strided_slice %31 {offsets = [0, 32], sizes = [2, 32], strides = [1, 1]} : vector<2x128xf32> to vector<2x32xf32>
    %34 = vector.extract_strided_slice %31 {offsets = [0, 64], sizes = [2, 32], strides = [1, 1]} : vector<2x128xf32> to vector<2x32xf32>
    %35 = vector.extract_strided_slice %31 {offsets = [0, 96], sizes = [2, 32], strides = [1, 1]} : vector<2x128xf32> to vector<2x32xf32>
    %36 = arith.mulf %33, %24 : vector<2x32xf32>
    %37 = arith.mulf %32, %34 : vector<2x32xf32>
    %38 = arith.addf %36, %37 : vector<2x32xf32>
    %39 = math.tanh %38 : vector<2x32xf32>
    %40 = arith.mulf %35, %39 : vector<2x32xf32>
    %41 = vector.extract_strided_slice %22 {offsets = [2, 0], sizes = [2, 128], strides = [1, 1]} : vector<16x128xf32> to vector<2x128xf32>
    %cst_21 = arith.constant dense<0.000000e+00> : vector<2x128xf32>
    %42 = tpu.matmul %40, %3, %cst_21 {dimension_numbers = #tpu.dot_dimension_numbers<[1], [0], [0], [1], [0, 0, 1, 1], [], []>} : vector<2x32xf32>, vector<32x128xf32>, vector<2x128xf32> -> vector<2x128xf32>
    %43 = arith.addf %41, %42 : vector<2x128xf32>
    %44 = arith.mulf %43, %16 : vector<2x128xf32>
    %45 = math.tanh %44 : vector<2x128xf32>
    %46 = arith.mulf %45, %16 : vector<2x128xf32>
    %47 = arith.addf %46, %19 : vector<2x128xf32>
    %48 = vector.extract_strided_slice %47 {offsets = [0, 0], sizes = [2, 32], strides = [1, 1]} : vector<2x128xf32> to vector<2x32xf32>
    %49 = vector.extract_strided_slice %47 {offsets = [0, 32], sizes = [2, 32], strides = [1, 1]} : vector<2x128xf32> to vector<2x32xf32>
    %50 = vector.extract_strided_slice %47 {offsets = [0, 64], sizes = [2, 32], strides = [1, 1]} : vector<2x128xf32> to vector<2x32xf32>
    %51 = vector.extract_strided_slice %47 {offsets = [0, 96], sizes = [2, 32], strides = [1, 1]} : vector<2x128xf32> to vector<2x32xf32>
    %52 = arith.mulf %49, %38 : vector<2x32xf32>
    %53 = arith.mulf %48, %50 : vector<2x32xf32>
    %54 = arith.addf %52, %53 : vector<2x32xf32>
    %55 = math.tanh %54 : vector<2x32xf32>
    %56 = arith.mulf %51, %55 : vector<2x32xf32>
    %57 = vector.extract_strided_slice %22 {offsets = [4, 0], sizes = [2, 128], strides = [1, 1]} : vector<16x128xf32> to vector<2x128xf32>
    %cst_22 = arith.constant dense<0.000000e+00> : vector<2x128xf32>
    %58 = tpu.matmul %56, %3, %cst_22 {dimension_numbers = #tpu.dot_dimension_numbers<[1], [0], [0], [1], [0, 0, 1, 1], [], []>} : vector<2x32xf32>, vector<32x128xf32>, vector<2x128xf32> -> vector<2x128xf32>
    %59 = arith.addf %57, %58 : vector<2x128xf32>
    %60 = arith.mulf %59, %16 : vector<2x128xf32>
    %61 = math.tanh %60 : vector<2x128xf32>
    %62 = arith.mulf %61, %16 : vector<2x128xf32>
    %63 = arith.addf %62, %19 : vector<2x128xf32>
    %64 = vector.extract_strided_slice %63 {offsets = [0, 0], sizes = [2, 32], strides = [1, 1]} : vector<2x128xf32> to vector<2x32xf32>
    %65 = vector.extract_strided_slice %63 {offsets = [0, 32], sizes = [2, 32], strides = [1, 1]} : vector<2x128xf32> to vector<2x32xf32>
    %66 = vector.extract_strided_slice %63 {offsets = [0, 64], sizes = [2, 32], strides = [1, 1]} : vector<2x128xf32> to vector<2x32xf32>
    %67 = vector.extract_strided_slice %63 {offsets = [0, 96], sizes = [2, 32], strides = [1, 1]} : vector<2x128xf32> to vector<2x32xf32>
    %68 = arith.mulf %65, %54 : vector<2x32xf32>
    %69 = arith.mulf %64, %66 : vector<2x32xf32>
    %70 = arith.addf %68, %69 : vector<2x32xf32>
    %71 = math.tanh %70 : vector<2x32xf32>
    %72 = arith.mulf %67, %71 : vector<2x32xf32>
    %73 = vector.extract_strided_slice %22 {offsets = [6, 0], sizes = [2, 128], strides = [1, 1]} : vector<16x128xf32> to vector<2x128xf32>
    %cst_23 = arith.constant dense<0.000000e+00> : vector<2x128xf32>
    %74 = tpu.matmul %72, %3, %cst_23 {dimension_numbers = #tpu.dot_dimension_numbers<[1], [0], [0], [1], [0, 0, 1, 1], [], []>} : vector<2x32xf32>, vector<32x128xf32>, vector<2x128xf32> -> vector<2x128xf32>
    %75 = arith.addf %73, %74 : vector<2x128xf32>
    %76 = arith.mulf %75, %16 : vector<2x128xf32>
    %77 = math.tanh %76 : vector<2x128xf32>
    %78 = arith.mulf %77, %16 : vector<2x128xf32>
    %79 = arith.addf %78, %19 : vector<2x128xf32>
    %80 = vector.extract_strided_slice %79 {offsets = [0, 0], sizes = [2, 32], strides = [1, 1]} : vector<2x128xf32> to vector<2x32xf32>
    %81 = vector.extract_strided_slice %79 {offsets = [0, 32], sizes = [2, 32], strides = [1, 1]} : vector<2x128xf32> to vector<2x32xf32>
    %82 = vector.extract_strided_slice %79 {offsets = [0, 64], sizes = [2, 32], strides = [1, 1]} : vector<2x128xf32> to vector<2x32xf32>
    %83 = vector.extract_strided_slice %79 {offsets = [0, 96], sizes = [2, 32], strides = [1, 1]} : vector<2x128xf32> to vector<2x32xf32>
    %84 = arith.mulf %81, %70 : vector<2x32xf32>
    %85 = arith.mulf %80, %82 : vector<2x32xf32>
    %86 = arith.addf %84, %85 : vector<2x32xf32>
    %87 = math.tanh %86 : vector<2x32xf32>
    %88 = arith.mulf %83, %87 : vector<2x32xf32>
    %89 = vector.extract_strided_slice %22 {offsets = [8, 0], sizes = [2, 128], strides = [1, 1]} : vector<16x128xf32> to vector<2x128xf32>
    %cst_24 = arith.constant dense<0.000000e+00> : vector<2x128xf32>
    %90 = tpu.matmul %88, %3, %cst_24 {dimension_numbers = #tpu.dot_dimension_numbers<[1], [0], [0], [1], [0, 0, 1, 1], [], []>} : vector<2x32xf32>, vector<32x128xf32>, vector<2x128xf32> -> vector<2x128xf32>
    %91 = arith.addf %89, %90 : vector<2x128xf32>
    %92 = arith.mulf %91, %16 : vector<2x128xf32>
    %93 = math.tanh %92 : vector<2x128xf32>
    %94 = arith.mulf %93, %16 : vector<2x128xf32>
    %95 = arith.addf %94, %19 : vector<2x128xf32>
    %96 = vector.extract_strided_slice %95 {offsets = [0, 0], sizes = [2, 32], strides = [1, 1]} : vector<2x128xf32> to vector<2x32xf32>
    %97 = vector.extract_strided_slice %95 {offsets = [0, 32], sizes = [2, 32], strides = [1, 1]} : vector<2x128xf32> to vector<2x32xf32>
    %98 = vector.extract_strided_slice %95 {offsets = [0, 64], sizes = [2, 32], strides = [1, 1]} : vector<2x128xf32> to vector<2x32xf32>
    %99 = vector.extract_strided_slice %95 {offsets = [0, 96], sizes = [2, 32], strides = [1, 1]} : vector<2x128xf32> to vector<2x32xf32>
    %100 = arith.mulf %97, %86 : vector<2x32xf32>
    %101 = arith.mulf %96, %98 : vector<2x32xf32>
    %102 = arith.addf %100, %101 : vector<2x32xf32>
    %103 = math.tanh %102 : vector<2x32xf32>
    %104 = arith.mulf %99, %103 : vector<2x32xf32>
    %105 = vector.extract_strided_slice %22 {offsets = [10, 0], sizes = [2, 128], strides = [1, 1]} : vector<16x128xf32> to vector<2x128xf32>
    %cst_25 = arith.constant dense<0.000000e+00> : vector<2x128xf32>
    %106 = tpu.matmul %104, %3, %cst_25 {dimension_numbers = #tpu.dot_dimension_numbers<[1], [0], [0], [1], [0, 0, 1, 1], [], []>} : vector<2x32xf32>, vector<32x128xf32>, vector<2x128xf32> -> vector<2x128xf32>
    %107 = arith.addf %105, %106 : vector<2x128xf32>
    %108 = arith.mulf %107, %16 : vector<2x128xf32>
    %109 = math.tanh %108 : vector<2x128xf32>
    %110 = arith.mulf %109, %16 : vector<2x128xf32>
    %111 = arith.addf %110, %19 : vector<2x128xf32>
    %112 = vector.extract_strided_slice %111 {offsets = [0, 0], sizes = [2, 32], strides = [1, 1]} : vector<2x128xf32> to vector<2x32xf32>
    %113 = vector.extract_strided_slice %111 {offsets = [0, 32], sizes = [2, 32], strides = [1, 1]} : vector<2x128xf32> to vector<2x32xf32>
    %114 = vector.extract_strided_slice %111 {offsets = [0, 64], sizes = [2, 32], strides = [1, 1]} : vector<2x128xf32> to vector<2x32xf32>
    %115 = vector.extract_strided_slice %111 {offsets = [0, 96], sizes = [2, 32], strides = [1, 1]} : vector<2x128xf32> to vector<2x32xf32>
    %116 = arith.mulf %113, %102 : vector<2x32xf32>
    %117 = arith.mulf %112, %114 : vector<2x32xf32>
    %118 = arith.addf %116, %117 : vector<2x32xf32>
    %119 = math.tanh %118 : vector<2x32xf32>
    %120 = arith.mulf %115, %119 : vector<2x32xf32>
    %121 = vector.extract_strided_slice %22 {offsets = [12, 0], sizes = [2, 128], strides = [1, 1]} : vector<16x128xf32> to vector<2x128xf32>
    %cst_26 = arith.constant dense<0.000000e+00> : vector<2x128xf32>
    %122 = tpu.matmul %120, %3, %cst_26 {dimension_numbers = #tpu.dot_dimension_numbers<[1], [0], [0], [1], [0, 0, 1, 1], [], []>} : vector<2x32xf32>, vector<32x128xf32>, vector<2x128xf32> -> vector<2x128xf32>
    %123 = arith.addf %121, %122 : vector<2x128xf32>
    %124 = arith.mulf %123, %16 : vector<2x128xf32>
    %125 = math.tanh %124 : vector<2x128xf32>
    %126 = arith.mulf %125, %16 : vector<2x128xf32>
    %127 = arith.addf %126, %19 : vector<2x128xf32>
    %128 = vector.extract_strided_slice %127 {offsets = [0, 0], sizes = [2, 32], strides = [1, 1]} : vector<2x128xf32> to vector<2x32xf32>
    %129 = vector.extract_strided_slice %127 {offsets = [0, 32], sizes = [2, 32], strides = [1, 1]} : vector<2x128xf32> to vector<2x32xf32>
    %130 = vector.extract_strided_slice %127 {offsets = [0, 64], sizes = [2, 32], strides = [1, 1]} : vector<2x128xf32> to vector<2x32xf32>
    %131 = vector.extract_strided_slice %127 {offsets = [0, 96], sizes = [2, 32], strides = [1, 1]} : vector<2x128xf32> to vector<2x32xf32>
    %132 = arith.mulf %129, %118 : vector<2x32xf32>
    %133 = arith.mulf %128, %130 : vector<2x32xf32>
    %134 = arith.addf %132, %133 : vector<2x32xf32>
    %135 = math.tanh %134 : vector<2x32xf32>
    %136 = arith.mulf %131, %135 : vector<2x32xf32>
    %137 = vector.extract_strided_slice %22 {offsets = [14, 0], sizes = [2, 128], strides = [1, 1]} : vector<16x128xf32> to vector<2x128xf32>
    %cst_27 = arith.constant dense<0.000000e+00> : vector<2x128xf32>
    %138 = tpu.matmul %136, %3, %cst_27 {dimension_numbers = #tpu.dot_dimension_numbers<[1], [0], [0], [1], [0, 0, 1, 1], [], []>} : vector<2x32xf32>, vector<32x128xf32>, vector<2x128xf32> -> vector<2x128xf32>
    %139 = arith.addf %137, %138 : vector<2x128xf32>
    %140 = arith.mulf %139, %16 : vector<2x128xf32>
    %141 = math.tanh %140 : vector<2x128xf32>
    %142 = arith.mulf %141, %16 : vector<2x128xf32>
    %143 = arith.addf %142, %19 : vector<2x128xf32>
    %144 = vector.extract_strided_slice %143 {offsets = [0, 0], sizes = [2, 32], strides = [1, 1]} : vector<2x128xf32> to vector<2x32xf32>
    %145 = vector.extract_strided_slice %143 {offsets = [0, 32], sizes = [2, 32], strides = [1, 1]} : vector<2x128xf32> to vector<2x32xf32>
    %146 = vector.extract_strided_slice %143 {offsets = [0, 64], sizes = [2, 32], strides = [1, 1]} : vector<2x128xf32> to vector<2x32xf32>
    %147 = vector.extract_strided_slice %143 {offsets = [0, 96], sizes = [2, 32], strides = [1, 1]} : vector<2x128xf32> to vector<2x32xf32>
    %148 = arith.mulf %145, %134 : vector<2x32xf32>
    %149 = arith.mulf %144, %146 : vector<2x32xf32>
    %150 = arith.addf %148, %149 : vector<2x32xf32>
    %151 = math.tanh %150 : vector<2x32xf32>
    %152 = arith.mulf %147, %151 : vector<2x32xf32>
    %153 = tpu.concatenate %40, %56, %72, %88, %104, %120, %136, %152 in 0 : vector<2x32xf32>, vector<2x32xf32>, vector<2x32xf32>, vector<2x32xf32>, vector<2x32xf32>, vector<2x32xf32>, vector<2x32xf32>, vector<2x32xf32> -> vector<16x32xf32>
    %cst_28 = arith.constant dense<0.000000e+00> : vector<16x128xf32>
    %154 = tpu.matmul %153, %5, %cst_28 {dimension_numbers = #tpu.dot_dimension_numbers<[1], [0], [0], [1], [0, 0, 1, 1], [], []>} : vector<16x32xf32>, vector<32x128xf32>, vector<16x128xf32> -> vector<16x128xf32>
    %155 = vector.broadcast %7 : vector<1x128xf32> to vector<16x128xf32>
    %156 = arith.addf %154, %155 : vector<16x128xf32>
    %cst_29 = arith.constant 0.000000e+00 : f32
    %157 = vector.broadcast %cst_29 : f32 to vector<2x32xf32>
    %cst_30 = arith.constant 0.000000e+00 : f32
    %158 = vector.broadcast %cst_30 : f32 to vector<2x32xf32>
    %159 = vector.extract_strided_slice %156 {offsets = [0, 0], sizes = [2, 128], strides = [1, 1]} : vector<16x128xf32> to vector<2x128xf32>
    %cst_31 = arith.constant dense<0.000000e+00> : vector<2x128xf32>
    %160 = tpu.matmul %157, %6, %cst_31 {dimension_numbers = #tpu.dot_dimension_numbers<[1], [0], [0], [1], [0, 0, 1, 1], [], []>} : vector<2x32xf32>, vector<32x128xf32>, vector<2x128xf32> -> vector<2x128xf32>
    %161 = arith.addf %159, %160 : vector<2x128xf32>
    %162 = arith.mulf %161, %16 : vector<2x128xf32>
    %163 = math.tanh %162 : vector<2x128xf32>
    %164 = arith.mulf %163, %16 : vector<2x128xf32>
    %165 = arith.addf %164, %19 : vector<2x128xf32>
    %166 = vector.extract_strided_slice %165 {offsets = [0, 0], sizes = [2, 32], strides = [1, 1]} : vector<2x128xf32> to vector<2x32xf32>
    %167 = vector.extract_strided_slice %165 {offsets = [0, 32], sizes = [2, 32], strides = [1, 1]} : vector<2x128xf32> to vector<2x32xf32>
    %168 = vector.extract_strided_slice %165 {offsets = [0, 64], sizes = [2, 32], strides = [1, 1]} : vector<2x128xf32> to vector<2x32xf32>
    %169 = vector.extract_strided_slice %165 {offsets = [0, 96], sizes = [2, 32], strides = [1, 1]} : vector<2x128xf32> to vector<2x32xf32>
    %170 = arith.mulf %167, %158 : vector<2x32xf32>
    %171 = arith.mulf %166, %168 : vector<2x32xf32>
    %172 = arith.addf %170, %171 : vector<2x32xf32>
    %173 = math.tanh %172 : vector<2x32xf32>
    %174 = arith.mulf %169, %173 : vector<2x32xf32>
    %175 = vector.extract_strided_slice %156 {offsets = [2, 0], sizes = [2, 128], strides = [1, 1]} : vector<16x128xf32> to vector<2x128xf32>
    %cst_32 = arith.constant dense<0.000000e+00> : vector<2x128xf32>
    %176 = tpu.matmul %174, %6, %cst_32 {dimension_numbers = #tpu.dot_dimension_numbers<[1], [0], [0], [1], [0, 0, 1, 1], [], []>} : vector<2x32xf32>, vector<32x128xf32>, vector<2x128xf32> -> vector<2x128xf32>
    %177 = arith.addf %175, %176 : vector<2x128xf32>
    %178 = arith.mulf %177, %16 : vector<2x128xf32>
    %179 = math.tanh %178 : vector<2x128xf32>
    %180 = arith.mulf %179, %16 : vector<2x128xf32>
    %181 = arith.addf %180, %19 : vector<2x128xf32>
    %182 = vector.extract_strided_slice %181 {offsets = [0, 0], sizes = [2, 32], strides = [1, 1]} : vector<2x128xf32> to vector<2x32xf32>
    %183 = vector.extract_strided_slice %181 {offsets = [0, 32], sizes = [2, 32], strides = [1, 1]} : vector<2x128xf32> to vector<2x32xf32>
    %184 = vector.extract_strided_slice %181 {offsets = [0, 64], sizes = [2, 32], strides = [1, 1]} : vector<2x128xf32> to vector<2x32xf32>
    %185 = vector.extract_strided_slice %181 {offsets = [0, 96], sizes = [2, 32], strides = [1, 1]} : vector<2x128xf32> to vector<2x32xf32>
    %186 = arith.mulf %183, %172 : vector<2x32xf32>
    %187 = arith.mulf %182, %184 : vector<2x32xf32>
    %188 = arith.addf %186, %187 : vector<2x32xf32>
    %189 = math.tanh %188 : vector<2x32xf32>
    %190 = arith.mulf %185, %189 : vector<2x32xf32>
    %191 = vector.extract_strided_slice %156 {offsets = [4, 0], sizes = [2, 128], strides = [1, 1]} : vector<16x128xf32> to vector<2x128xf32>
    %cst_33 = arith.constant dense<0.000000e+00> : vector<2x128xf32>
    %192 = tpu.matmul %190, %6, %cst_33 {dimension_numbers = #tpu.dot_dimension_numbers<[1], [0], [0], [1], [0, 0, 1, 1], [], []>} : vector<2x32xf32>, vector<32x128xf32>, vector<2x128xf32> -> vector<2x128xf32>
    %193 = arith.addf %191, %192 : vector<2x128xf32>
    %194 = arith.mulf %193, %16 : vector<2x128xf32>
    %195 = math.tanh %194 : vector<2x128xf32>
    %196 = arith.mulf %195, %16 : vector<2x128xf32>
    %197 = arith.addf %196, %19 : vector<2x128xf32>
    %198 = vector.extract_strided_slice %197 {offsets = [0, 0], sizes = [2, 32], strides = [1, 1]} : vector<2x128xf32> to vector<2x32xf32>
    %199 = vector.extract_strided_slice %197 {offsets = [0, 32], sizes = [2, 32], strides = [1, 1]} : vector<2x128xf32> to vector<2x32xf32>
    %200 = vector.extract_strided_slice %197 {offsets = [0, 64], sizes = [2, 32], strides = [1, 1]} : vector<2x128xf32> to vector<2x32xf32>
    %201 = vector.extract_strided_slice %197 {offsets = [0, 96], sizes = [2, 32], strides = [1, 1]} : vector<2x128xf32> to vector<2x32xf32>
    %202 = arith.mulf %199, %188 : vector<2x32xf32>
    %203 = arith.mulf %198, %200 : vector<2x32xf32>
    %204 = arith.addf %202, %203 : vector<2x32xf32>
    %205 = math.tanh %204 : vector<2x32xf32>
    %206 = arith.mulf %201, %205 : vector<2x32xf32>
    %207 = vector.extract_strided_slice %156 {offsets = [6, 0], sizes = [2, 128], strides = [1, 1]} : vector<16x128xf32> to vector<2x128xf32>
    %cst_34 = arith.constant dense<0.000000e+00> : vector<2x128xf32>
    %208 = tpu.matmul %206, %6, %cst_34 {dimension_numbers = #tpu.dot_dimension_numbers<[1], [0], [0], [1], [0, 0, 1, 1], [], []>} : vector<2x32xf32>, vector<32x128xf32>, vector<2x128xf32> -> vector<2x128xf32>
    %209 = arith.addf %207, %208 : vector<2x128xf32>
    %210 = arith.mulf %209, %16 : vector<2x128xf32>
    %211 = math.tanh %210 : vector<2x128xf32>
    %212 = arith.mulf %211, %16 : vector<2x128xf32>
    %213 = arith.addf %212, %19 : vector<2x128xf32>
    %214 = vector.extract_strided_slice %213 {offsets = [0, 0], sizes = [2, 32], strides = [1, 1]} : vector<2x128xf32> to vector<2x32xf32>
    %215 = vector.extract_strided_slice %213 {offsets = [0, 32], sizes = [2, 32], strides = [1, 1]} : vector<2x128xf32> to vector<2x32xf32>
    %216 = vector.extract_strided_slice %213 {offsets = [0, 64], sizes = [2, 32], strides = [1, 1]} : vector<2x128xf32> to vector<2x32xf32>
    %217 = vector.extract_strided_slice %213 {offsets = [0, 96], sizes = [2, 32], strides = [1, 1]} : vector<2x128xf32> to vector<2x32xf32>
    %218 = arith.mulf %215, %204 : vector<2x32xf32>
    %219 = arith.mulf %214, %216 : vector<2x32xf32>
    %220 = arith.addf %218, %219 : vector<2x32xf32>
    %221 = math.tanh %220 : vector<2x32xf32>
    %222 = arith.mulf %217, %221 : vector<2x32xf32>
    %223 = vector.extract_strided_slice %156 {offsets = [8, 0], sizes = [2, 128], strides = [1, 1]} : vector<16x128xf32> to vector<2x128xf32>
    %cst_35 = arith.constant dense<0.000000e+00> : vector<2x128xf32>
    %224 = tpu.matmul %222, %6, %cst_35 {dimension_numbers = #tpu.dot_dimension_numbers<[1], [0], [0], [1], [0, 0, 1, 1], [], []>} : vector<2x32xf32>, vector<32x128xf32>, vector<2x128xf32> -> vector<2x128xf32>
    %225 = arith.addf %223, %224 : vector<2x128xf32>
    %226 = arith.mulf %225, %16 : vector<2x128xf32>
    %227 = math.tanh %226 : vector<2x128xf32>
    %228 = arith.mulf %227, %16 : vector<2x128xf32>
    %229 = arith.addf %228, %19 : vector<2x128xf32>
    %230 = vector.extract_strided_slice %229 {offsets = [0, 0], sizes = [2, 32], strides = [1, 1]} : vector<2x128xf32> to vector<2x32xf32>
    %231 = vector.extract_strided_slice %229 {offsets = [0, 32], sizes = [2, 32], strides = [1, 1]} : vector<2x128xf32> to vector<2x32xf32>
    %232 = vector.extract_strided_slice %229 {offsets = [0, 64], sizes = [2, 32], strides = [1, 1]} : vector<2x128xf32> to vector<2x32xf32>
    %233 = vector.extract_strided_slice %229 {offsets = [0, 96], sizes = [2, 32], strides = [1, 1]} : vector<2x128xf32> to vector<2x32xf32>
    %234 = arith.mulf %231, %220 : vector<2x32xf32>
    %235 = arith.mulf %230, %232 : vector<2x32xf32>
    %236 = arith.addf %234, %235 : vector<2x32xf32>
    %237 = math.tanh %236 : vector<2x32xf32>
    %238 = arith.mulf %233, %237 : vector<2x32xf32>
    %239 = vector.extract_strided_slice %156 {offsets = [10, 0], sizes = [2, 128], strides = [1, 1]} : vector<16x128xf32> to vector<2x128xf32>
    %cst_36 = arith.constant dense<0.000000e+00> : vector<2x128xf32>
    %240 = tpu.matmul %238, %6, %cst_36 {dimension_numbers = #tpu.dot_dimension_numbers<[1], [0], [0], [1], [0, 0, 1, 1], [], []>} : vector<2x32xf32>, vector<32x128xf32>, vector<2x128xf32> -> vector<2x128xf32>
    %241 = arith.addf %239, %240 : vector<2x128xf32>
    %242 = arith.mulf %241, %16 : vector<2x128xf32>
    %243 = math.tanh %242 : vector<2x128xf32>
    %244 = arith.mulf %243, %16 : vector<2x128xf32>
    %245 = arith.addf %244, %19 : vector<2x128xf32>
    %246 = vector.extract_strided_slice %245 {offsets = [0, 0], sizes = [2, 32], strides = [1, 1]} : vector<2x128xf32> to vector<2x32xf32>
    %247 = vector.extract_strided_slice %245 {offsets = [0, 32], sizes = [2, 32], strides = [1, 1]} : vector<2x128xf32> to vector<2x32xf32>
    %248 = vector.extract_strided_slice %245 {offsets = [0, 64], sizes = [2, 32], strides = [1, 1]} : vector<2x128xf32> to vector<2x32xf32>
    %249 = vector.extract_strided_slice %245 {offsets = [0, 96], sizes = [2, 32], strides = [1, 1]} : vector<2x128xf32> to vector<2x32xf32>
    %250 = arith.mulf %247, %236 : vector<2x32xf32>
    %251 = arith.mulf %246, %248 : vector<2x32xf32>
    %252 = arith.addf %250, %251 : vector<2x32xf32>
    %253 = math.tanh %252 : vector<2x32xf32>
    %254 = arith.mulf %249, %253 : vector<2x32xf32>
    %255 = vector.extract_strided_slice %156 {offsets = [12, 0], sizes = [2, 128], strides = [1, 1]} : vector<16x128xf32> to vector<2x128xf32>
    %cst_37 = arith.constant dense<0.000000e+00> : vector<2x128xf32>
    %256 = tpu.matmul %254, %6, %cst_37 {dimension_numbers = #tpu.dot_dimension_numbers<[1], [0], [0], [1], [0, 0, 1, 1], [], []>} : vector<2x32xf32>, vector<32x128xf32>, vector<2x128xf32> -> vector<2x128xf32>
    %257 = arith.addf %255, %256 : vector<2x128xf32>
    %258 = arith.mulf %257, %16 : vector<2x128xf32>
    %259 = math.tanh %258 : vector<2x128xf32>
    %260 = arith.mulf %259, %16 : vector<2x128xf32>
    %261 = arith.addf %260, %19 : vector<2x128xf32>
    %262 = vector.extract_strided_slice %261 {offsets = [0, 0], sizes = [2, 32], strides = [1, 1]} : vector<2x128xf32> to vector<2x32xf32>
    %263 = vector.extract_strided_slice %261 {offsets = [0, 32], sizes = [2, 32], strides = [1, 1]} : vector<2x128xf32> to vector<2x32xf32>
    %264 = vector.extract_strided_slice %261 {offsets = [0, 64], sizes = [2, 32], strides = [1, 1]} : vector<2x128xf32> to vector<2x32xf32>
    %265 = vector.extract_strided_slice %261 {offsets = [0, 96], sizes = [2, 32], strides = [1, 1]} : vector<2x128xf32> to vector<2x32xf32>
    %266 = arith.mulf %263, %252 : vector<2x32xf32>
    %267 = arith.mulf %262, %264 : vector<2x32xf32>
    %268 = arith.addf %266, %267 : vector<2x32xf32>
    %269 = math.tanh %268 : vector<2x32xf32>
    %270 = arith.mulf %265, %269 : vector<2x32xf32>
    %271 = vector.extract_strided_slice %156 {offsets = [14, 0], sizes = [2, 128], strides = [1, 1]} : vector<16x128xf32> to vector<2x128xf32>
    %cst_38 = arith.constant dense<0.000000e+00> : vector<2x128xf32>
    %272 = tpu.matmul %270, %6, %cst_38 {dimension_numbers = #tpu.dot_dimension_numbers<[1], [0], [0], [1], [0, 0, 1, 1], [], []>} : vector<2x32xf32>, vector<32x128xf32>, vector<2x128xf32> -> vector<2x128xf32>
    %273 = arith.addf %271, %272 : vector<2x128xf32>
    %274 = arith.mulf %273, %16 : vector<2x128xf32>
    %275 = math.tanh %274 : vector<2x128xf32>
    %276 = arith.mulf %275, %16 : vector<2x128xf32>
    %277 = arith.addf %276, %19 : vector<2x128xf32>
    %278 = vector.extract_strided_slice %277 {offsets = [0, 0], sizes = [2, 32], strides = [1, 1]} : vector<2x128xf32> to vector<2x32xf32>
    %279 = vector.extract_strided_slice %277 {offsets = [0, 32], sizes = [2, 32], strides = [1, 1]} : vector<2x128xf32> to vector<2x32xf32>
    %280 = vector.extract_strided_slice %277 {offsets = [0, 64], sizes = [2, 32], strides = [1, 1]} : vector<2x128xf32> to vector<2x32xf32>
    %281 = vector.extract_strided_slice %277 {offsets = [0, 96], sizes = [2, 32], strides = [1, 1]} : vector<2x128xf32> to vector<2x32xf32>
    %282 = arith.mulf %279, %268 : vector<2x32xf32>
    %283 = arith.mulf %278, %280 : vector<2x32xf32>
    %284 = arith.addf %282, %283 : vector<2x32xf32>
    %285 = math.tanh %284 : vector<2x32xf32>
    %286 = arith.mulf %281, %285 : vector<2x32xf32>
    %287 = tpu.concatenate %152, %286 in 0 : vector<2x32xf32>, vector<2x32xf32> -> vector<4x32xf32>
    %c0_39 = arith.constant 0 : index
    %c0_40 = arith.constant 0 : index
    %288 = vector.load %arg7[%c0_39, %c0_40] : memref<32x4xf32, #tpu.memory_space<vmem>>, vector<32x4xf32>
    %cst_41 = arith.constant dense<0.000000e+00> : vector<4x4xf32>
    %289 = tpu.matmul %287, %288, %cst_41 {dimension_numbers = #tpu.dot_dimension_numbers<[1], [0], [0], [1], [0, 0, 1, 1], [], []>} : vector<4x32xf32>, vector<32x4xf32>, vector<4x4xf32> -> vector<4x4xf32>
    %c0_42 = arith.constant 0 : index
    %c0_43 = arith.constant 0 : index
    %290 = vector.load %arg8[%c0_42, %c0_43] : memref<1x4xf32, #tpu.memory_space<vmem>>, vector<1x4xf32>
    %291 = vector.broadcast %290 : vector<1x4xf32> to vector<4x4xf32>
    %292 = arith.addf %289, %291 : vector<4x4xf32>
    %c0_44 = arith.constant 0 : index
    %c0_45 = arith.constant 0 : index
    %293 = vector.load %arg9[%c0_44, %c0_45] : memref<4x4xf32, #tpu.memory_space<vmem>>, vector<4x4xf32>
    tpu.vector_store %arg9[%c0_44, %c0_45], %292 {strides = array<i32>} : memref<4x4xf32, #tpu.memory_space<vmem>>, vector<4x4xf32>,
    return
  }
}

</mosaic_0001>

<bundles_post_ra>
// kernel: tpu_custom_call.1
= control target key start
LH: loop header
LB: loop body
LE: loop exit
PB: predicated region body
PF: predicated region fallthrough
CT: control target
= control target key end

     0   :  { %14 = vsyncpa [#allocation3], 0  ;;  %s3089_s0 = inlined_call_operand.hbm [shape: f32[8,2,16], index: 0, kind: input, shape index: {}]   ;;  %s3090_s1 = inlined_call_operand.hbm [shape: f32[16,128], index: 1, kind: input, shape index: {}]   ;;  %s3091_s2 = inlined_call_operand.vmem [shape: f32[32,128], index: 2, kind: input, shape index: {}]   ;;  %s3092_s3 = inlined_call_operand.vmem [shape: f32[1,128], index: 3, kind: input, shape index: {}]   ;;  %s3093_s4 = inlined_call_operand.hbm [shape: f32[32,128], index: 4, kind: input, shape index: {}]   ;;  %s3094_s5 = inlined_call_operand.hbm [shape: f32[32,128], index: 5, kind: input, shape index: {}]   ;;  %s3095_s6 = inlined_call_operand.vmem [shape: f32[1,128], index: 6, kind: input, shape index: {}]   ;;  %s3096_s7 = inlined_call_operand.vmem [shape: f32[32,4], index: 7, kind: input, shape index: {}]   ;;  %s3097_s8 = inlined_call_operand.vmem [shape: f32[1,4], index: 8, kind: input, shape index: {}]   ;;  %s3098_s9 = inlined_call_operand.hbm [shape: f32[4,4], index: 9, kind: output, shape index: {}]  }
   0x1   :  { %15 = vsyncpa [#allocation6], 0 }
   0x2   :  { %16 = vsyncpa [#allocation9], 0 }
   0x3   :  { %17 = vsyncpa [#allocation4], 0  ;;  %s2601_s30 = smov [#allocation5]  }
   0x4   :  { %s35_s10 = sshll.u32 %s2601_s30, 4  ;;  %s36_s10 = int_to_ptr.vmem [resolvable:$true] %s35_s10 }
   0x5   :  { %s2501_s11 = scalar_lea.vmem %s36_s10, 256  ;;  %p2506_p1 = scmp.lt.s32.totalorder %s36_s10, %s36_s10 }
   0x6   :  { %p2502_p0 = scmp.ne.s32.totalorder %s36_s10, %s2501_s11  ;;  %p2507_p2 = scmp.lt.s32.totalorder %s2501_s11, %s2501_s11 }
   0x8   :  { %p2508_p3 = por %p2507_p2, %p2506_p1 }
   0xa   :  { %p2509_p4 = pnand %p2508_p3, %p2502_p0 }
   0xc   :  { %2512 = shalt.err (!%p2509_p4)
}
   0xd   :  { %s2602_s12 = smov 128   ;;  %s2603_s13 = smov 8  }
   0xe   :  { %41 = dma.hbm_to_vmem [thread:$0]  %s3090_s1, 256, %s36_s10, [#allocation6], %s2602_s12, %s2602_s12, %s2603_s13  }
   0xf   :  { %s2604_s16 = smov [#allocation2]  }
  0x10   :  { %s23_s17 = sshll.u32 %s2604_s16, 4  ;;  %s24_s17 = int_to_ptr.vmem [resolvable:$true] %s23_s17 }
  0x11   :  { %s2521_s18 = scalar_lea.vmem %s24_s17, 256  ;;  %p2526_p6 = scmp.lt.s32.totalorder %s24_s17, %s24_s17 }
  0x12   :  { %p2522_p5 = scmp.ne.s32.totalorder %s24_s17, %s2521_s18  ;;  %p2527_p7 = scmp.lt.s32.totalorder %s2521_s18, %s2521_s18 }
  0x14   :  { %p2528_p8 = por %p2527_p7, %p2526_p6 }
  0x16   :  { %p2529_p9 = pnand %p2528_p8, %p2522_p5 }
  0x18   :  { %2532 = shalt.err (!%p2529_p9)
}
  0x19   :  { %s2605_s19 = smov 32   ;;  %s2606_s20 = smov 2  }
  0x1a   :  { %29 = dma.hbm_to_vmem [thread:$0]  %s3089_s0, 256, %s24_s17, [#allocation3], %s2605_s19, %s2605_s19, %s2606_s20  }
  0x1b   :  { %s2607_s23 = smov [#allocation7]   ;;  %s2608_s24 = smov [#allocation8]  }
  0x1c   :  { %s51_s1 = sshll.u32 %s2607_s23, 4  ;;  %s63_s25 = sshll.u32 %s2608_s24, 4  ;;  %s52_s1 = int_to_ptr.vmem [resolvable:$true] %s51_s1  ;;  %s64_s25 = int_to_ptr.vmem [resolvable:$true] %s63_s25 }
  0x1d   :  { %s2541_s26 = scalar_lea.vmem %s52_s1, 512  ;;  %p2546_p11 = scmp.lt.s32.totalorder %s52_s1, %s52_s1 }
  0x1e   :  { %p2542_p10 = scmp.ne.s32.totalorder %s52_s1, %s2541_s26  ;;  %p2547_p12 = scmp.lt.s32.totalorder %s2541_s26, %s2541_s26 }
  0x20   :  { %p2548_p13 = por %p2547_p12, %p2546_p11 }
  0x22   :  { %p2549_p0 = pnand %p2548_p13, %p2542_p10 }
  0x24   :  { %2552 = shalt.err (!%p2549_p0)
}
  0x25   :  { %57 = dma.hbm_to_vmem [thread:$0]  %s3093_s4, 512, %s52_s1, [#allocation6], %s2602_s12, %s2602_s12, %s2603_s13  }
  0x26   :  { %s2561_s0 = scalar_lea.vmem %s64_s25, 512  ;;  %p2566_p2 = scmp.lt.s32.totalorder %s64_s25, %s64_s25 }
  0x27   :  { %p2562_p1 = scmp.ne.s32.totalorder %s64_s25, %s2561_s0  ;;  %p2567_p3 = scmp.lt.s32.totalorder %s2561_s0, %s2561_s0 }
  0x29   :  { %p2568_p4 = por %p2567_p3, %p2566_p2 }
  0x2b   :  { %p2569_p5 = pnand %p2568_p4, %p2562_p1 }
  0x2d   :  { %2572 = shalt.err (!%p2569_p5)
}
  0x2e   :  { %69 = dma.hbm_to_vmem [thread:$0]  %s3094_s5, 512, %s64_s25, [#allocation9], %s2602_s12, %s2602_s12, %s2603_s13  }
  0x2f   :  { %2593 = dma.done.wait [#allocation3], 256  }
  0x30   :  { %2594 = vsyncadd [#allocation3], 4294967040 }
  0x31   :  { %2595 = dma.done.wait [#allocation6], 768  }
  0x32   :  { %2596 = vsyncadd [#allocation6], 4294966528 }
  0x33   :  { %2597 = dma.done.wait [#allocation9], 512  }
  0x34   :  { %2598 = vsyncadd [#allocation9], 4294966784  ;;  %v112_v0 = vlaneseq  ;;  %v2609_v1 = vmov 0.0   ;;  %v2610_v2 = vmov 1983009808   ;;  %vm2611_vm0 = vmmov 0  }
  0x35   :  { %2217 = vmatprep.subr.mxu1 %v2609_v1  ;;  %v136_v3 = vunpack.c.l.s4 %v2610_v2  ;;  %2225 = vmatprep.mubr.msk.f32.mxu1 %vm2611_vm0, %v2609_v1  ;;  %v2695_v6 = vld [vmem:[%s3091_s2 + $0x18] sm:$0xff]  ;;  %v2700_v8 = vld [vmem:[%s3091_s2 + $0x10] sm:$0xff]  ;;  %v88_v11 = vld [vmem:[#allocation2] sm:$0x3]  ;;  %vm167_vm1 = vcmask 130048   ;;  %v2612_v39 = vmov 0.5  }
  0x36   :  { %v139_v5 = vshrl.u32 %v112_v0, 7  ;;  %v97_v7 = vld [vmem:[#allocation5 + $0x8] sm:$0xff]  ;;  %2218 = vmatpush3.msra.mxu1 %v2695_v6  ;;  %v96_v10 = vld [vmem:[#allocation5] sm:$0xff]  ;;  %v89_v12 = vld [vmem:[#allocation2 + $0x2] sm:$0x3]  ;;  %v113_v31 = vand.u32 127, %v112_v0 }
  0x37   :  { %v137_v4 = vunpack.c.0.s8 %v136_v3  ;;  %2210 = vmatprep.subr.mxu0 %v97_v7  ;;  %2219 = vmatprep.subr.mxu1 %v2609_v1  ;;  %v90_v13 = vld [vmem:[#allocation2 + $0x4] sm:$0x3]  ;;  %v91_v14 = vld [vmem:[#allocation2 + $0x6] sm:$0x3]  ;;  %v133_v15 = vcombine.low %v88_v11, %v89_v12  ;;  %v2707_v16 = vld [vmem:[%s3091_s2 + $0x8] sm:$0xff]  ;;  %vm247_vm5 = vcmask 261120  }
  0x38   :  { %2211 = vmatpush3.msra.mxu0 %v97_v7  ;;  %2220 = vmatpush3.msra.mxu1 %v2700_v8  ;;  %v134_v17 = vcombine.low %v90_v13, %v91_v14  ;;  %v92_v18 = vld [vmem:[#allocation2 + $0x8] sm:$0x3]  ;;  %v93_v19 = vld [vmem:[#allocation2 + $0xa] sm:$0x3]  ;;  %v94_v20 = vld [vmem:[#allocation2 + $0xc] sm:$0x3] }
  0x39   :  { %v140_v9 = vsub.s32 %v137_v4, %v139_v5  ;;  %2212 = vmatprep.subr.mxu0 %v96_v10  ;;  %2221 = vmatprep.subr.mxu1 %v2609_v1  ;;  %v95_v22 = vld [vmem:[#allocation2 + $0xe] sm:$0x3]  ;;  %v150_v23 = vcombine.low %v92_v18, %v93_v19  ;;  %v2714_v24 = vld [vmem:[%s3091_s2] sm:$0xff]  ;;  %vm114_vm2 = vcmp.ge.s32.totalorder %v113_v31, 64  ;;  %vm115_vm3 = vcmp.lt.s32.totalorder %v113_v31, 96  ;;  %s2614_s27 = smov [#allocation10]  }
  0x3a   :  { %2213 = vmatpush3.msra.mxu0 %v96_v10  ;;  %2222 = vmatpush3.msra.mxu1 %v2707_v16  ;;  %v151_v26 = vcombine.low %v94_v20, %v95_v22  ;;  %v2093_v33 = vld [vmem:[%s3092_s3] ss:$0 sm:$0xff]  ;;  %vm116_vm4 = vmand %vm114_vm2, %vm115_vm3  ;;  %s2613_s3 = smov 64   ;;  %vm1066_vm6 = vcmask 1041408   ;;  %vm1068_vm7 = vcmask 1043456   ;;  %vm1070_vm8 = vcmask 1045504  }
  0x3b   :  { %v141_v21 = vrot.slane %v133_v15, %v140_v9  ;;  %v148_v25 = vrot.slane %v134_v17, %v140_v9  ;;  %2228 = vmatprep.subr.mxu0 %v2609_v1  ;;  %v158_v27 = vrot.slane %v150_v23, %v140_v9  ;;  %2223 = vmatprep.subr.mxu1 %v2609_v1  ;;  %v2750_v40 = vsel %vm116_vm4, 1.0, %v2612_v39  ;;  %s2082_s28 = sshll.u32 %s2614_s27, 4  ;;  %s2083_s28 = int_to_ptr.vmem [resolvable:$true] %s2082_s28 }
  0x3c   :  { %v165_v29 = vrot.slane %v151_v26, %v140_v9  ;;  %2224 = vmatpush3.msra.mxu1 %v2714_v24  ;;  %v2754_v44 = vsel %vm116_vm4, 0.0, %v2612_v39  ;;  %vm2074_vm9 = vcmask 27648   ;;  %s2573_s0 = scalar_lea.vmem %s2083_s28, 64  ;;  %p2578_p7 = scmp.lt.s32.totalorder %s2083_s28, %s2083_s28 }
  0x3d   :  { %v149_v28 = vcombine.low %v141_v21, %v148_v25  ;;  %2226 = vmatmul.mubr.f32.vlgmr.msra.gmra.mxu1 %v2609_v1  ;;  %2239 = vmatprep.subr.mxu1 %v2609_v1  ;;  %p2574_p6 = scmp.ne.s32.totalorder %s2083_s28, %s2573_s0  ;;  %p2579_p8 = scmp.lt.s32.totalorder %s2573_s0, %s2573_s0 }
  0x3e   :  { %v166_v30 = vcombine.low %v158_v27, %v165_v29  ;;  %2240 = vmatpush3.msra.mxu1 %v2695_v6  ;;  %2247 = vmatprep.mubr.msk.f32.mxu1 %vm2611_vm0, %v2609_v1 }
  0x3f   :  { %2214 = vmatprep.mubr.msk.f32.mxu0 %vm167_vm1, %v149_v28  ;;  %2241 = vmatprep.subr.mxu1 %v2609_v1  ;;  %p2580_p9 = por %p2579_p8, %p2578_p7 }
  0x40   :  { %2215 = vmatmul.mubr.msk.f32.vlgmr.msra.gmra.mxu0 %vm167_vm1, %v166_v30  ;;  %2242 = vmatpush3.msra.mxu1 %v2700_v8 }
  0x41   :  { %2229 = vmatpush3.msra.mxu0 %v2695_v6  ;;  %2236 = vmatprep.mubr.msk.f32.mxu0 %vm2611_vm0, %v2609_v1  ;;  %p2581_p10 = pnand %p2580_p9, %p2574_p6 }
  0x42   :  { %2230 = vmatprep.subr.mxu0 %v2609_v1  ;;  %2243 = vmatprep.subr.mxu1 %v2609_v1 }
  0x43   :  { %2231 = vmatpush3.msra.mxu0 %v2700_v8  ;;  %2244 = vmatpush3.msra.mxu1 %v2707_v16 }
  0x44   :  { %2232 = vmatprep.subr.mxu0 %v2609_v1  ;;  %2245 = vmatprep.subr.mxu1 %v2609_v1 }
  0x45   :  { %2233 = vmatpush3.msra.mxu0 %v2707_v16  ;;  %2246 = vmatpush3.msra.mxu1 %v2714_v24 }
  0x46   :  { %2234 = vmatprep.subr.mxu0 %v2609_v1  ;;  %2261 = vmatprep.subr.mxu1 %v2609_v1 }
  0x47   :  { %2235 = vmatpush3.msra.mxu0 %v2714_v24 }
  0x48   :  { %2250 = vmatprep.subr.mxu0 %v2609_v1 }
  0xfd   :  { %v317_v32 = vpop.f32.mrf.mxu1 }
  0xff   :  { %v2227_v34 = vpop.f32.mrf.mxu1 }
 0x100   :  { %v2216_v35 = vpop.f32.mrf.mxu0 }
 0x101   :  { %v2746_v36 = vadd.f32 %v2216_v35, %v2093_v33 }
 0x102   :  { %v238_v37 = vpop.f32.mrf.mxu0 }
 0x103   :  { %v2748_v38 = vadd.f32 %v2093_v33, %v238_v37 }
 0x105   :  { %v321_v41 = vadd.f32 %v317_v32, %v2748_v38 }
 0x107   :  { %v322_v42 = vmul.f32 %v321_v41, %v2750_v40 }
 0x109   :  { %2429 = vtanh.f32 %v322_v42 }
 0x116   :  { %v2430_v43 = vpop.eup %2429 }
 0x117   :  { %v324_v45 = vmul.f32 %v2430_v43, %v2750_v40 }
 0x119   :  { %v325_v46 = vadd.f32 %v324_v45, %v2754_v44 }
 0x11b   :  { %328 = vrot.lane.b32.xlu0 %v325_v46, %s2613_s3  ;;  %v326_v49 = vmul.f32 0.0, %v325_v46 }
 0x18d   :  { %v329_v47 = vpop.permute.xlu0 %328 }
 0x18e   :  { %v331_v48 = vmul.f32 %v329_v47, %v325_v46 }
 0x190   :  { %333 = vrot.lane.b32.xlu0 %v331_v48, %s2605_s19 }
 0x202   :  { %v334_v50 = vpop.permute.xlu0 %333 }
 0x203   :  { %v336_v51 = vadd.f32 %v334_v50, %v326_v49 }
 0x205   :  { %2431 = vtanh.f32 %v336_v51  ;;  %v427_v3 = vrot.slane %v336_v51, 6 }
 0x212   :  { %v2432_v52 = vpop.eup %2431 }
 0x213   :  { %339 = vrot.lane.b32.xlu1 %v2432_v52, %s2613_s3 }
 0x285   :  { %v340_v53 = vpop.permute.xlu1 %339 }
 0x286   :  { %v2761_v54 = vmul.f32 %v340_v53, %v325_v46 }
 0x288   :  { %344 = vrot.lane.b32.xlu1 %v2761_v54, %s2605_s19 }
 0x2fa   :  { %v345_v55 = vpop.permute.xlu1 %344 }
 0x2fb   :  { %2237 = vmatmul.mubr.msk.f32.vlgmr.msra.gmra.mxu0 %vm247_vm5, %v345_v55 }
 0x2fc   :  { %2251 = vmatpush3.msra.mxu0 %v2695_v6  ;;  %2258 = vmatprep.mubr.msk.f32.mxu0 %vm2611_vm0, %v2609_v1 }
 0x2fd   :  { %2252 = vmatprep.subr.mxu0 %v2609_v1 }
 0x2fe   :  { %2253 = vmatpush3.msra.mxu0 %v2700_v8 }
 0x2ff   :  { %2254 = vmatprep.subr.mxu0 %v2609_v1 }
 0x300   :  { %2255 = vmatpush3.msra.mxu0 %v2707_v16 }
 0x301   :  { %2256 = vmatprep.subr.mxu0 %v2609_v1 }
 0x302   :  { %2257 = vmatpush3.msra.mxu0 %v2714_v24 }
 0x303   :  { %2272 = vmatprep.subr.mxu0 %v2609_v1 }
 0x3bb   :  { %v414_v56 = vpop.f32.mrf.mxu0 }
 0x3bc   :  { %v419_v57 = vrot.slane %v414_v56, 6 }
 0x3bd   :  { %v2238_v58 = vpop.f32.mrf.mxu0 }
 0x3be   :  { %v421_v59 = vadd.f32 %v419_v57, %v2748_v38 }
 0x3c0   :  { %v422_v60 = vmul.f32 %v421_v59, %v2750_v40 }
 0x3c2   :  { %2433 = vtanh.f32 %v422_v60 }
 0x3cf   :  { %v2434_v61 = vpop.eup %2433 }
 0x3d0   :  { %v424_v62 = vmul.f32 %v2434_v61, %v2750_v40 }
 0x3d2   :  { %v425_v63 = vadd.f32 %v424_v62, %v2754_v44 }
 0x3d4   :  { %431 = vrot.lane.b32.xlu0 %v425_v63, %s2613_s3  ;;  %v429_v4 = vmul.f32 %v427_v3, %v425_v63 }
 0x446   :  { %v432_v0 = vpop.permute.xlu0 %431 }
 0x447   :  { %v434_v2 = vmul.f32 %v432_v0, %v425_v63 }
 0x449   :  { %436 = vrot.lane.b32.xlu1 %v434_v2, %s2605_s19 }
 0x4bb   :  { %v437_v5 = vpop.permute.xlu1 %436 }
 0x4bc   :  { %v439_v7 = vadd.f32 %v437_v5, %v429_v4 }
 0x4be   :  { %2435 = vtanh.f32 %v439_v7  ;;  %v531_v26 = vrot.slane %v439_v7, 6 }
 0x4cb   :  { %v2436_v9 = vpop.eup %2435 }
 0x4cc   :  { %442 = vrot.lane.b32.xlu0 %v2436_v9, %s2613_s3 }
 0x53e   :  { %v443_v10 = vpop.permute.xlu0 %442 }
 0x53f   :  { %v445_v11 = vmul.f32 %v443_v10, %v425_v63 }
 0x541   :  { %v447_v12 = vrot.slane %v445_v11, 2  ;;  %v1067_v33 = vsel %vm1066_vm6, %v2761_v54, %v445_v11 }
 0x543   :  { %448 = vrot.lane.b32.xlu1 %v447_v12, %s2605_s19 }
 0x5b5   :  { %v449_v13 = vpop.permute.xlu1 %448 }
 0x5b6   :  { %2248 = vmatmul.mubr.msk.f32.vlgmr.msra.gmra.mxu1 %vm247_vm5, %v449_v13 }
 0x5b7   :  { %2262 = vmatpush3.msra.mxu1 %v2695_v6  ;;  %2269 = vmatprep.mubr.msk.f32.mxu1 %vm2611_vm0, %v2609_v1 }
 0x5b8   :  { %2263 = vmatprep.subr.mxu1 %v2609_v1 }
 0x5b9   :  { %2264 = vmatpush3.msra.mxu1 %v2700_v8 }
 0x5ba   :  { %2265 = vmatprep.subr.mxu1 %v2609_v1 }
 0x5bb   :  { %2266 = vmatpush3.msra.mxu1 %v2707_v16 }
 0x5bc   :  { %2267 = vmatprep.subr.mxu1 %v2609_v1 }
 0x5bd   :  { %2268 = vmatpush3.msra.mxu1 %v2714_v24 }
 0x5be   :  { %2283 = vmatprep.subr.mxu1 %v2609_v1 }
 0x676   :  { %v518_v14 = vpop.f32.mrf.mxu1 }
 0x677   :  { %v523_v15 = vrot.slane %v518_v14, 4 }
 0x678   :  { %v2249_v17 = vpop.f32.mrf.mxu1 }
 0x679   :  { %v525_v18 = vadd.f32 %v523_v15, %v2748_v38 }
 0x67b   :  { %v526_v19 = vmul.f32 %v525_v18, %v2750_v40 }
 0x67d   :  { %2437 = vtanh.f32 %v526_v19 }
 0x68a   :  { %v2438_v20 = vpop.eup %2437 }
 0x68b   :  { %v528_v21 = vmul.f32 %v2438_v20, %v2750_v40 }
 0x68d   :  { %v529_v22 = vadd.f32 %v528_v21, %v2754_v44 }
 0x68f   :  { %535 = vrot.lane.b32.xlu0 %v529_v22, %s2613_s3  ;;  %v533_v27 = vmul.f32 %v531_v26, %v529_v22 }
 0x701   :  { %v536_v23 = vpop.permute.xlu0 %535 }
 0x702   :  { %v538_v25 = vmul.f32 %v536_v23, %v529_v22 }
 0x704   :  { %540 = vrot.lane.b32.xlu1 %v538_v25, %s2605_s19 }
 0x776   :  { %v541_v28 = vpop.permute.xlu1 %540 }
 0x777   :  { %v543_v29 = vadd.f32 %v541_v28, %v533_v27 }
 0x779   :  { %2439 = vtanh.f32 %v543_v29  ;;  %v635_v51 = vrot.slane %v543_v29, 6 }
 0x786   :  { %v2440_v30 = vpop.eup %2439 }
 0x787   :  { %546 = vrot.lane.b32.xlu0 %v2440_v30, %s2613_s3 }
 0x7f9   :  { %v547_v31 = vpop.permute.xlu0 %546 }
 0x7fa   :  { %v549_v32 = vmul.f32 %v547_v31, %v529_v22 }
 0x7fc   :  { %v551_v34 = vrot.slane %v549_v32, 4  ;;  %v1069_v35 = vsel %vm1068_vm7, %v1067_v33, %v549_v32 }
 0x7fe   :  { %552 = vrot.lane.b32.xlu1 %v551_v34, %s2605_s19 }
 0x870   :  { %v553_v37 = vpop.permute.xlu1 %552 }
 0x871   :  { %2259 = vmatmul.mubr.msk.f32.vlgmr.msra.gmra.mxu0 %vm247_vm5, %v553_v37 }
 0x872   :  { %2273 = vmatpush3.msra.mxu0 %v2695_v6  ;;  %2280 = vmatprep.mubr.msk.f32.mxu0 %vm2611_vm0, %v2609_v1 }
 0x873   :  { %2274 = vmatprep.subr.mxu0 %v2609_v1 }
 0x874   :  { %2275 = vmatpush3.msra.mxu0 %v2700_v8 }
 0x875   :  { %2276 = vmatprep.subr.mxu0 %v2609_v1 }
 0x876   :  { %2277 = vmatpush3.msra.mxu0 %v2707_v16 }
 0x877   :  { %2278 = vmatprep.subr.mxu0 %v2609_v1 }
 0x878   :  { %2279 = vmatpush3.msra.mxu0 %v2714_v24 }
 0x879   :  { %2294 = vmatprep.subr.mxu0 %v2609_v1 }
 0x931   :  { %v622_v39 = vpop.f32.mrf.mxu0 }
 0x932   :  { %v627_v41 = vrot.slane %v622_v39, 2 }
 0x933   :  { %v2260_v42 = vpop.f32.mrf.mxu0 }
 0x934   :  { %v629_v43 = vadd.f32 %v627_v41, %v2748_v38 }
 0x936   :  { %v630_v45 = vmul.f32 %v629_v43, %v2750_v40 }
 0x938   :  { %2441 = vtanh.f32 %v630_v45 }
 0x945   :  { %v2442_v46 = vpop.eup %2441 }
 0x946   :  { %v632_v47 = vmul.f32 %v2442_v46, %v2750_v40 }
 0x948   :  { %v633_v48 = vadd.f32 %v632_v47, %v2754_v44 }
 0x94a   :  { %639 = vrot.lane.b32.xlu0 %v633_v48, %s2613_s3  ;;  %v637_v52 = vmul.f32 %v635_v51, %v633_v48 }
 0x9bc   :  { %v640_v49 = vpop.permute.xlu0 %639 }
 0x9bd   :  { %v642_v50 = vmul.f32 %v640_v49, %v633_v48 }
 0x9bf   :  { %644 = vrot.lane.b32.xlu1 %v642_v50, %s2605_s19 }
 0xa31   :  { %v645_v53 = vpop.permute.xlu1 %644 }
 0xa32   :  { %v647_v54 = vadd.f32 %v645_v53, %v637_v52 }
 0xa34   :  { %2443 = vtanh.f32 %v647_v54  ;;  %v736_v7 = vrot.slane %v647_v54, 6 }
 0xa41   :  { %v2444_v38 = vpop.eup %2443 }
 0xa42   :  { %650 = vrot.lane.b32.xlu0 %v2444_v38, %s2613_s3 }
 0xab4   :  { %v651_v55 = vpop.permute.xlu0 %650 }
 0xab5   :  { %v653_v56 = vmul.f32 %v651_v55, %v633_v48 }
 0xab7   :  { %v655_v57 = vrot.slane %v653_v56, 6  ;;  %v2825_v58 = vsel %vm1070_vm8, %v1069_v35, %v653_v56 }
 0xab9   :  { %656 = vrot.lane.b32.xlu1 %v655_v57, %s2605_s19 }
 0xb2b   :  { %v657_v59 = vpop.permute.xlu1 %656 }
 0xb2c   :  { %2270 = vmatmul.mubr.msk.f32.vlgmr.msra.gmra.mxu1 %vm247_vm5, %v657_v59 }
 0xb2d   :  { %2284 = vmatpush3.msra.mxu1 %v2695_v6  ;;  %2291 = vmatprep.mubr.msk.f32.mxu1 %vm2611_vm0, %v2609_v1 }
 0xb2e   :  { %2285 = vmatprep.subr.mxu1 %v2609_v1 }
 0xb2f   :  { %2286 = vmatpush3.msra.mxu1 %v2700_v8 }
 0xb30   :  { %2287 = vmatprep.subr.mxu1 %v2609_v1 }
 0xb31   :  { %2288 = vmatpush3.msra.mxu1 %v2707_v16 }
 0xb32   :  { %2289 = vmatprep.subr.mxu1 %v2609_v1 }
 0xb33   :  { %2290 = vmatpush3.msra.mxu1 %v2714_v24 }
 0xbec   :  { %v726_v60 = vpop.f32.mrf.mxu1 }
 0xbed   :  { %v730_v61 = vadd.f32 %v726_v60, %v2746_v36 }
 0xbee   :  { %v2271_v62 = vpop.f32.mrf.mxu1 }
 0xbef   :  { %v731_v63 = vmul.f32 %v730_v61, %v2750_v40 }
 0xbf1   :  { %2445 = vtanh.f32 %v731_v63 }
 0xbfe   :  { %v2446_v0 = vpop.eup %2445 }
 0xbff   :  { %v733_v2 = vmul.f32 %v2446_v0, %v2750_v40 }
 0xc01   :  { %v734_v3 = vadd.f32 %v733_v2, %v2754_v44 }
 0xc03   :  { %740 = vrot.lane.b32.xlu0 %v734_v3, %s2613_s3  ;;  %v738_v9 = vmul.f32 %v736_v7, %v734_v3 }
 0xc75   :  { %v741_v4 = vpop.permute.xlu0 %740 }
 0xc76   :  { %v743_v5 = vmul.f32 %v741_v4, %v734_v3 }
 0xc78   :  { %745 = vrot.lane.b32.xlu1 %v743_v5, %s2605_s19 }
 0xcea   :  { %v746_v10 = vpop.permute.xlu1 %745 }
 0xceb   :  { %v748_v11 = vadd.f32 %v746_v10, %v738_v9 }
 0xced   :  { %2447 = vtanh.f32 %v748_v11 }
 0xcfa   :  { %v2448_v12 = vpop.eup %2447 }
 0xcfb   :  { %751 = vrot.lane.b32.xlu0 %v2448_v12, %s2613_s3  ;;  %v105_v12 = vld [vmem:[#allocation7 + $0x10] sm:$0xff] }
 0xd6d   :  { %v752_v13 = vpop.permute.xlu0 %751 }
 0xd6e   :  { %v754_v14 = vmul.f32 %v752_v13, %v734_v3  ;;  %v2890_v13 = vld [vmem:[#allocation8 + $0x18] sm:$0xff] }
 0xd70   :  { %756 = vrot.lane.b32.xlu1 %v754_v14, %s2605_s19 }
 0xde2   :  { %v757_v15 = vpop.permute.xlu1 %756 }
 0xde3   :  { %2281 = vmatmul.mubr.msk.f32.vlgmr.msra.gmra.mxu0 %vm247_vm5, %v757_v15  ;;  %v104_v15 = vld [vmem:[#allocation7 + $0x8] sm:$0xff] }
 0xde4   :  { %2295 = vmatpush3.msra.mxu0 %v2695_v6  ;;  %2302 = vmatprep.mubr.msk.f32.mxu0 %vm2611_vm0, %v2609_v1 }
 0xde5   :  { %2296 = vmatprep.subr.mxu0 %v2609_v1 }
 0xde6   :  { %2297 = vmatpush3.msra.mxu0 %v2700_v8 }
 0xde7   :  { %2298 = vmatprep.subr.mxu0 %v2609_v1 }
 0xde8   :  { %2299 = vmatpush3.msra.mxu0 %v2707_v16 }
 0xde9   :  { %2300 = vmatprep.subr.mxu0 %v2609_v1 }
 0xdea   :  { %2301 = vmatpush3.msra.mxu0 %v2714_v24  ;;  %v839_v24 = vrot.slane %v748_v11, 6  ;;  %v106_v11 = vld [vmem:[#allocation7 + $0x18] sm:$0xff] }
 0xdeb   :  { %2316 = vmatprep.subr.mxu0 %v2609_v1  ;;  %2305 = vmatprep.subr.mxu1 %v106_v11 }
 0xea3   :  { %v826_v17 = vpop.f32.mrf.mxu0 }
 0xea4   :  { %v831_v18 = vrot.slane %v826_v17, 6  ;;  %v103_v17 = vld [vmem:[#allocation7] sm:$0xff] }
 0xea5   :  { %v2282_v6 = vpop.f32.mrf.mxu0 }
 0xea6   :  { %v833_v19 = vadd.f32 %v831_v18, %v2746_v36  ;;  %v2904_v6 = vld [vmem:[#allocation8] sm:$0xff] }
 0xea8   :  { %v834_v20 = vmul.f32 %v833_v19, %v2750_v40 }
 0xeaa   :  { %2449 = vtanh.f32 %v834_v20 }
 0xeb7   :  { %v2450_v21 = vpop.eup %2449 }
 0xeb8   :  { %v836_v8 = vmul.f32 %v2450_v21, %v2750_v40 }
 0xeba   :  { %v837_v22 = vadd.f32 %v836_v8, %v2754_v44 }
 0xebc   :  { %843 = vrot.lane.b32.xlu0 %v837_v22, %s2613_s3  ;;  %v841_v25 = vmul.f32 %v839_v24, %v837_v22 }
 0xf2e   :  { %v844_v16 = vpop.permute.xlu0 %843 }
 0xf2f   :  { %v846_v23 = vmul.f32 %v844_v16, %v837_v22 }
 0xf31   :  { %848 = vrot.lane.b32.xlu1 %v846_v23, %s2605_s19  ;;  %v2103_v23 = vld [vmem:[%s3095_s6] ss:$0 sm:$0xff] }
 0xfa3   :  { %v849_v26 = vpop.permute.xlu1 %848 }
 0xfa4   :  { %v851_v27 = vadd.f32 %v849_v26, %v841_v25 }
 0xfa6   :  { %2451 = vtanh.f32 %v851_v27  ;;  %v943_v47 = vrot.slane %v851_v27, 6 }
 0xfb3   :  { %v2452_v28 = vpop.eup %2451 }
 0xfb4   :  { %854 = vrot.lane.b32.xlu0 %v2452_v28, %s2613_s3 }
0x1026   :  { %v855_v29 = vpop.permute.xlu0 %854 }
0x1027   :  { %v857_v30 = vmul.f32 %v855_v29, %v837_v22 }
0x1029   :  { %v859_v31 = vrot.slane %v857_v30, 2  ;;  %v1072_v54 = vsel %vm1066_vm6, %v754_v14, %v857_v30  ;;  %v2893_v14 = vld [vmem:[#allocation8 + $0x10] sm:$0xff] }
0x102b   :  { %860 = vrot.lane.b32.xlu1 %v859_v31, %s2605_s19 }
0x109d   :  { %v861_v32 = vpop.permute.xlu1 %860 }
0x109e   :  { %2292 = vmatmul.mubr.msk.f32.vlgmr.msra.gmra.mxu1 %vm247_vm5, %v861_v32 }
0x109f   :  { %2306 = vmatpush3.msra.mxu1 %v106_v11 }
0x10a0   :  { %2307 = vmatprep.subr.mxu1 %v105_v12 }
0x10a1   :  { %2308 = vmatpush3.msra.mxu1 %v105_v12 }
0x10a2   :  { %2309 = vmatprep.subr.mxu1 %v104_v15 }
0x10a3   :  { %2310 = vmatpush3.msra.mxu1 %v104_v15 }
0x10a4   :  { %2311 = vmatprep.subr.mxu1 %v103_v17 }
0x10a5   :  { %2312 = vmatpush3.msra.mxu1 %v103_v17 }
0x10a6   :  { %2327 = vmatprep.subr.mxu1 %v2609_v1 }
0x115e   :  { %v930_v33 = vpop.f32.mrf.mxu1 }
0x115f   :  { %v935_v34 = vrot.slane %v930_v33, 4 }
0x1160   :  { %v2293_v35 = vpop.f32.mrf.mxu1 }
0x1161   :  { %v937_v37 = vadd.f32 %v935_v34, %v2746_v36 }
0x1163   :  { %v938_v39 = vmul.f32 %v937_v37, %v2750_v40 }
0x1165   :  { %2453 = vtanh.f32 %v938_v39 }
0x1172   :  { %v2454_v41 = vpop.eup %2453 }
0x1173   :  { %v940_v42 = vmul.f32 %v2454_v41, %v2750_v40 }
0x1175   :  { %v941_v43 = vadd.f32 %v940_v42, %v2754_v44 }
0x1177   :  { %947 = vrot.lane.b32.xlu0 %v941_v43, %s2613_s3  ;;  %v945_v48 = vmul.f32 %v943_v47, %v941_v43 }
0x11e9   :  { %v948_v45 = vpop.permute.xlu0 %947 }
0x11ea   :  { %v950_v46 = vmul.f32 %v948_v45, %v941_v43 }
0x11ec   :  { %952 = vrot.lane.b32.xlu1 %v950_v46, %s2605_s19 }
0x125e   :  { %v953_v49 = vpop.permute.xlu1 %952 }
0x125f   :  { %v955_v50 = vadd.f32 %v953_v49, %v945_v48 }
0x1261   :  { %2455 = vtanh.f32 %v955_v50  ;;  %v1047_v5 = vrot.slane %v955_v50, 6 }
0x126e   :  { %v2456_v51 = vpop.eup %2455 }
0x126f   :  { %958 = vrot.lane.b32.xlu0 %v2456_v51, %s2613_s3 }
0x12e1   :  { %v959_v52 = vpop.permute.xlu0 %958 }
0x12e2   :  { %v961_v53 = vmul.f32 %v959_v52, %v941_v43 }
0x12e4   :  { %v963_v38 = vrot.slane %v961_v53, 4  ;;  %v2875_v55 = vsel %vm1068_vm7, %v1072_v54, %v961_v53 }
0x12e6   :  { %964 = vrot.lane.b32.xlu1 %v963_v38, %s2605_s19 }
0x1358   :  { %v965_v56 = vpop.permute.xlu1 %964 }
0x1359   :  { %2303 = vmatmul.mubr.msk.f32.vlgmr.msra.gmra.mxu0 %vm247_vm5, %v965_v56 }
0x135a   :  { %2324 = vmatprep.mubr.msk.f32.mxu0 %vm2611_vm0, %v2609_v1  ;;  %2317 = vmatpush3.msra.mxu0 %v2890_v13 }
0x135b   :  { %2318 = vmatprep.subr.mxu0 %v2609_v1 }
0x135c   :  { %2319 = vmatpush3.msra.mxu0 %v2893_v14 }
0x135d   :  { %2320 = vmatprep.subr.mxu0 %v2609_v1 }
0x1419   :  { %v1034_v57 = vpop.f32.mrf.mxu0 }
0x141a   :  { %v1039_v59 = vrot.slane %v1034_v57, 2 }
0x141b   :  { %v2304_v60 = vpop.f32.mrf.mxu0 }
0x141c   :  { %v1041_v61 = vadd.f32 %v1039_v59, %v2746_v36 }
0x141e   :  { %v1042_v62 = vmul.f32 %v1041_v61, %v2750_v40 }
0x1420   :  { %2457 = vtanh.f32 %v1042_v62 }
0x142d   :  { %v2458_v63 = vpop.eup %2457 }
0x142e   :  { %v1044_v0 = vmul.f32 %v2458_v63, %v2750_v40 }
0x1430   :  { %v1045_v2 = vadd.f32 %v1044_v0, %v2754_v44 }
0x1432   :  { %1051 = vrot.lane.b32.xlu0 %v1045_v2, %s2613_s3  ;;  %v1049_v7 = vmul.f32 %v1047_v5, %v1045_v2 }
0x14a4   :  { %v1052_v3 = vpop.permute.xlu0 %1051 }
0x14a5   :  { %v1054_v4 = vmul.f32 %v1052_v3, %v1045_v2 }
0x14a7   :  { %1056 = vrot.lane.b32.xlu1 %v1054_v4, %s2605_s19 }
0x14ab   :  { %1083 = vrot.lane.b32.xlu1 %v2825_v58, %s2605_s19  ;;  %v2896_v58 = vld [vmem:[#allocation8 + $0x8] sm:$0xff] }
0x14ac   :  { %2321 = vmatpush3.msra.mxu0 %v2896_v58 }
0x14ad   :  { %2322 = vmatprep.subr.mxu0 %v2609_v1 }
0x14ae   :  { %2323 = vmatpush3.msra.mxu0 %v2904_v6 }
0x14af   :  { %2325 = vmatmul.mubr.f32.vlgmr.msra.gmra.mxu0 %v2609_v1  ;;  %2338 = vmatprep.subr.mxu0 %v2609_v1 }
0x14b0   :  { %2339 = vmatpush3.msra.mxu0 %v2890_v13  ;;  %2346 = vmatprep.mubr.msk.f32.mxu0 %vm2611_vm0, %v2609_v1 }
0x14b1   :  { %2340 = vmatprep.subr.mxu0 %v2609_v1 }
0x14b2   :  { %2341 = vmatpush3.msra.mxu0 %v2893_v14 }
0x14b3   :  { %2342 = vmatprep.subr.mxu0 %v2609_v1 }
0x14b4   :  { %2343 = vmatpush3.msra.mxu0 %v2896_v58 }
0x14b5   :  { %2344 = vmatprep.subr.mxu0 %v2609_v1 }
0x14b6   :  { %2345 = vmatpush3.msra.mxu0 %v2904_v6 }
0x14b7   :  { %2360 = vmatprep.subr.mxu0 %v2609_v1 }
0x1519   :  { %v1057_v36 = vpop.permute.xlu1 %1056 }
0x151a   :  { %v1059_v9 = vadd.f32 %v1057_v36, %v1049_v7 }
0x151c   :  { %2459 = vtanh.f32 %v1059_v9 }
0x151d   :  { %v1084_v10 = vpop.permute.xlu1 %1083 }
0x151e   :  { %2313 = vmatprep.mubr.msk.f32.mxu1 %vm247_vm5, %v1084_v10 }
0x1529   :  { %v2460_v18 = vpop.eup %2459 }
0x152a   :  { %1062 = vrot.lane.b32.xlu0 %v2460_v18, %s2613_s3 }
0x156f   :  { %v1232_v22 = vpop.f32.mrf.mxu0 }
0x1571   :  { %v2326_v16 = vpop.f32.mrf.mxu0 }
0x159c   :  { %v1063_v19 = vpop.permute.xlu0 %1062 }
0x159d   :  { %v2918_v20 = vmul.f32 %v1063_v19, %v1045_v2 }
0x159f   :  { %v1074_v21 = vsel %vm1070_vm8, %v2875_v55, %v2918_v20 }
0x15a0   :  { %1085 = vrot.lane.b32.xlu0 %v1074_v21, %s2605_s19 }
0x1612   :  { %v1086_v8 = vpop.permute.xlu0 %1085 }
0x1613   :  { %2314 = vmatmul.mubr.msk.f32.vlgmr.msra.gmra.mxu1 %vm247_vm5, %v1086_v8 }
0x1614   :  { %2328 = vmatpush3.msra.mxu1 %v2890_v13  ;;  %2335 = vmatprep.mubr.msk.f32.mxu1 %vm2611_vm0, %v2609_v1 }
0x1615   :  { %2329 = vmatprep.subr.mxu1 %v2609_v1 }
0x1616   :  { %2330 = vmatpush3.msra.mxu1 %v2893_v14 }
0x1617   :  { %2331 = vmatprep.subr.mxu1 %v2609_v1 }
0x1618   :  { %2332 = vmatpush3.msra.mxu1 %v2896_v58 }
0x1619   :  { %2333 = vmatprep.subr.mxu1 %v2609_v1 }
0x161a   :  { %2334 = vmatpush3.msra.mxu1 %v2904_v6 }
0x161b   :  { %2349 = vmatprep.subr.mxu1 %v2609_v1 }
0x16d3   :  { %v2315_v24 = vpop.f32.mrf.mxu1 }
0x16d4   :  { %v2939_v25 = vadd.f32 %v2315_v24, %v2103_v23 }
0x16d5   :  { %v1157_v26 = vpop.f32.mrf.mxu1 }
0x16d6   :  { %v2941_v27 = vadd.f32 %v2103_v23, %v1157_v26 }
0x16d8   :  { %v1236_v28 = vadd.f32 %v1232_v22, %v2941_v27 }
0x16da   :  { %v1237_v29 = vmul.f32 %v1236_v28, %v2750_v40 }
0x16dc   :  { %2461 = vtanh.f32 %v1237_v29 }
0x16e9   :  { %v2462_v30 = vpop.eup %2461 }
0x16ea   :  { %v1239_v31 = vmul.f32 %v2462_v30, %v2750_v40 }
0x16ec   :  { %v1240_v32 = vadd.f32 %v1239_v31, %v2754_v44 }
0x16ee   :  { %1243 = vrot.lane.b32.xlu1 %v1240_v32, %s2613_s3  ;;  %v1241_v35 = vmul.f32 0.0, %v1240_v32 }
0x1760   :  { %v1244_v33 = vpop.permute.xlu1 %1243 }
0x1761   :  { %v1246_v34 = vmul.f32 %v1244_v33, %v1240_v32 }
0x1763   :  { %1248 = vrot.lane.b32.xlu0 %v1246_v34, %s2605_s19 }
0x17d5   :  { %v1249_v37 = vpop.permute.xlu0 %1248 }
0x17d6   :  { %v1251_v39 = vadd.f32 %v1249_v37, %v1241_v35 }
0x17d8   :  { %2463 = vtanh.f32 %v1251_v39  ;;  %v1342_v55 = vrot.slane %v1251_v39, 6 }
0x17e5   :  { %v2464_v41 = vpop.eup %2463 }
0x17e6   :  { %1254 = vrot.lane.b32.xlu1 %v2464_v41, %s2613_s3 }
0x1858   :  { %v1255_v42 = vpop.permute.xlu1 %1254 }
0x1859   :  { %v1257_v43 = vmul.f32 %v1255_v42, %v1240_v32 }
0x185b   :  { %1259 = vrot.lane.b32.xlu0 %v1257_v43, %s2605_s19 }
0x18cd   :  { %v1260_v45 = vpop.permute.xlu0 %1259 }
0x18ce   :  { %2336 = vmatmul.mubr.msk.f32.vlgmr.msra.gmra.mxu1 %vm247_vm5, %v1260_v45 }
0x18cf   :  { %2350 = vmatpush3.msra.mxu1 %v2890_v13  ;;  %2357 = vmatprep.mubr.msk.f32.mxu1 %vm2611_vm0, %v2609_v1 }
0x18d0   :  { %2351 = vmatprep.subr.mxu1 %v2609_v1 }
0x18d1   :  { %2352 = vmatpush3.msra.mxu1 %v2893_v14 }
0x18d2   :  { %2353 = vmatprep.subr.mxu1 %v2609_v1 }
0x18d3   :  { %2354 = vmatpush3.msra.mxu1 %v2896_v58 }
0x18d4   :  { %2355 = vmatprep.subr.mxu1 %v2609_v1 }
0x18d5   :  { %2356 = vmatpush3.msra.mxu1 %v2904_v6 }
0x18d6   :  { %2371 = vmatprep.subr.mxu1 %v2609_v1 }
0x198e   :  { %v1329_v46 = vpop.f32.mrf.mxu1 }
0x198f   :  { %v1334_v47 = vrot.slane %v1329_v46, 6 }
0x1990   :  { %v2337_v48 = vpop.f32.mrf.mxu1 }
0x1991   :  { %v1336_v49 = vadd.f32 %v1334_v47, %v2941_v27 }
0x1993   :  { %v1337_v50 = vmul.f32 %v1336_v49, %v2750_v40 }
0x1995   :  { %2465 = vtanh.f32 %v1337_v50 }
0x19a2   :  { %v2466_v51 = vpop.eup %2465 }
0x19a3   :  { %v1339_v52 = vmul.f32 %v2466_v51, %v2750_v40 }
0x19a5   :  { %v1340_v53 = vadd.f32 %v1339_v52, %v2754_v44 }
0x19a7   :  { %1346 = vrot.lane.b32.xlu1 %v1340_v53, %s2613_s3  ;;  %v1344_v56 = vmul.f32 %v1342_v55, %v1340_v53 }
0x1a19   :  { %v1347_v54 = vpop.permute.xlu1 %1346 }
0x1a1a   :  { %v1349_v38 = vmul.f32 %v1347_v54, %v1340_v53 }
0x1a1c   :  { %1351 = vrot.lane.b32.xlu0 %v1349_v38, %s2605_s19 }
0x1a8e   :  { %v1352_v57 = vpop.permute.xlu0 %1351 }
0x1a8f   :  { %v1354_v59 = vadd.f32 %v1352_v57, %v1344_v56 }
0x1a91   :  { %2467 = vtanh.f32 %v1354_v59  ;;  %v1446_v15 = vrot.slane %v1354_v59, 6 }
0x1a9e   :  { %v2468_v60 = vpop.eup %2467 }
0x1a9f   :  { %1357 = vrot.lane.b32.xlu1 %v2468_v60, %s2613_s3 }
0x1b11   :  { %v1358_v61 = vpop.permute.xlu1 %1357 }
0x1b12   :  { %v1360_v62 = vmul.f32 %v1358_v61, %v1340_v53 }
0x1b14   :  { %v1362_v63 = vrot.slane %v1360_v62, 2 }
0x1b16   :  { %1363 = vrot.lane.b32.xlu0 %v1362_v63, %s2605_s19 }
0x1b88   :  { %v1364_v0 = vpop.permute.xlu0 %1363 }
0x1b89   :  { %2347 = vmatmul.mubr.msk.f32.vlgmr.msra.gmra.mxu0 %vm247_vm5, %v1364_v0 }
0x1b8a   :  { %2361 = vmatpush3.msra.mxu0 %v2890_v13  ;;  %2368 = vmatprep.mubr.msk.f32.mxu0 %vm2611_vm0, %v2609_v1 }
0x1b8b   :  { %2362 = vmatprep.subr.mxu0 %v2609_v1 }
0x1b8c   :  { %2363 = vmatpush3.msra.mxu0 %v2893_v14 }
0x1b8d   :  { %2364 = vmatprep.subr.mxu0 %v2609_v1 }
0x1b8e   :  { %2365 = vmatpush3.msra.mxu0 %v2896_v58 }
0x1b8f   :  { %2366 = vmatprep.subr.mxu0 %v2609_v1 }
0x1b90   :  { %2367 = vmatpush3.msra.mxu0 %v2904_v6 }
0x1b91   :  { %2382 = vmatprep.subr.mxu0 %v2609_v1 }
0x1c49   :  { %v1433_v2 = vpop.f32.mrf.mxu0 }
0x1c4a   :  { %v1438_v3 = vrot.slane %v1433_v2, 4 }
0x1c4b   :  { %v2348_v4 = vpop.f32.mrf.mxu0 }
0x1c4c   :  { %v1440_v5 = vadd.f32 %v1438_v3, %v2941_v27 }
0x1c4e   :  { %v1441_v7 = vmul.f32 %v1440_v5, %v2750_v40 }
0x1c50   :  { %2469 = vtanh.f32 %v1441_v7 }
0x1c5d   :  { %v2470_v36 = vpop.eup %2469 }
0x1c5e   :  { %v1443_v9 = vmul.f32 %v2470_v36, %v2750_v40 }
0x1c60   :  { %v1444_v10 = vadd.f32 %v1443_v9, %v2754_v44 }
0x1c62   :  { %1450 = vrot.lane.b32.xlu1 %v1444_v10, %s2613_s3  ;;  %v1448_v17 = vmul.f32 %v1446_v15, %v1444_v10 }
0x1cd4   :  { %v1451_v11 = vpop.permute.xlu1 %1450 }
0x1cd5   :  { %v1453_v12 = vmul.f32 %v1451_v11, %v1444_v10 }
0x1cd7   :  { %1455 = vrot.lane.b32.xlu0 %v1453_v12, %s2605_s19 }
0x1d49   :  { %v1456_v18 = vpop.permute.xlu0 %1455 }
0x1d4a   :  { %v1458_v19 = vadd.f32 %v1456_v18, %v1448_v17 }
0x1d4c   :  { %2471 = vtanh.f32 %v1458_v19  ;;  %v1550_v37 = vrot.slane %v1458_v19, 6 }
0x1d59   :  { %v2472_v21 = vpop.eup %2471 }
0x1d5a   :  { %1461 = vrot.lane.b32.xlu1 %v2472_v21, %s2613_s3 }
0x1dcc   :  { %v1462_v8 = vpop.permute.xlu1 %1461 }
0x1dcd   :  { %v1464_v22 = vmul.f32 %v1462_v8, %v1444_v10 }
0x1dcf   :  { %v1466_v16 = vrot.slane %v1464_v22, 4 }
0x1dd1   :  { %1467 = vrot.lane.b32.xlu0 %v1466_v16, %s2605_s19 }
0x1e43   :  { %v1468_v23 = vpop.permute.xlu0 %1467 }
0x1e44   :  { %2358 = vmatmul.mubr.msk.f32.vlgmr.msra.gmra.mxu1 %vm247_vm5, %v1468_v23 }
0x1e45   :  { %2372 = vmatpush3.msra.mxu1 %v2890_v13  ;;  %2379 = vmatprep.mubr.msk.f32.mxu1 %vm2611_vm0, %v2609_v1 }
0x1e46   :  { %2373 = vmatprep.subr.mxu1 %v2609_v1 }
0x1e47   :  { %2374 = vmatpush3.msra.mxu1 %v2893_v14 }
0x1e48   :  { %2375 = vmatprep.subr.mxu1 %v2609_v1 }
0x1e49   :  { %2376 = vmatpush3.msra.mxu1 %v2896_v58 }
0x1e4a   :  { %2377 = vmatprep.subr.mxu1 %v2609_v1 }
0x1e4b   :  { %2378 = vmatpush3.msra.mxu1 %v2904_v6 }
0x1e4c   :  { %2393 = vmatprep.subr.mxu1 %v2609_v1 }
0x1f04   :  { %v1537_v24 = vpop.f32.mrf.mxu1 }
0x1f05   :  { %v1542_v26 = vrot.slane %v1537_v24, 2 }
0x1f06   :  { %v2359_v28 = vpop.f32.mrf.mxu1 }
0x1f07   :  { %v1544_v29 = vadd.f32 %v1542_v26, %v2941_v27 }
0x1f09   :  { %v1545_v30 = vmul.f32 %v1544_v29, %v2750_v40 }
0x1f0b   :  { %2473 = vtanh.f32 %v1545_v30 }
0x1f18   :  { %v2474_v31 = vpop.eup %2473 }
0x1f19   :  { %v1547_v32 = vmul.f32 %v2474_v31, %v2750_v40 }
0x1f1b   :  { %v1548_v33 = vadd.f32 %v1547_v32, %v2754_v44 }
0x1f1d   :  { %1554 = vrot.lane.b32.xlu1 %v1548_v33, %s2613_s3  ;;  %v1552_v39 = vmul.f32 %v1550_v37, %v1548_v33 }
0x1f8f   :  { %v1555_v34 = vpop.permute.xlu1 %1554 }
0x1f90   :  { %v1557_v35 = vmul.f32 %v1555_v34, %v1548_v33 }
0x1f92   :  { %1559 = vrot.lane.b32.xlu0 %v1557_v35, %s2605_s19 }
0x2004   :  { %v1560_v41 = vpop.permute.xlu0 %1559 }
0x2005   :  { %v1562_v42 = vadd.f32 %v1560_v41, %v1552_v39 }
0x2007   :  { %2475 = vtanh.f32 %v1562_v42  ;;  %v1651_v56 = vrot.slane %v1562_v42, 6 }
0x2014   :  { %v2476_v27 = vpop.eup %2475 }
0x2015   :  { %1565 = vrot.lane.b32.xlu1 %v2476_v27, %s2613_s3 }
0x2087   :  { %v1566_v43 = vpop.permute.xlu1 %1565 }
0x2088   :  { %v1568_v45 = vmul.f32 %v1566_v43, %v1548_v33 }
0x208a   :  { %v1570_v46 = vrot.slane %v1568_v45, 6 }
0x208c   :  { %1571 = vrot.lane.b32.xlu0 %v1570_v46, %s2605_s19 }
0x20fe   :  { %v1572_v47 = vpop.permute.xlu0 %1571 }
0x20ff   :  { %2369 = vmatmul.mubr.msk.f32.vlgmr.msra.gmra.mxu0 %vm247_vm5, %v1572_v47 }
0x2100   :  { %2383 = vmatpush3.msra.mxu0 %v2890_v13  ;;  %2390 = vmatprep.mubr.msk.f32.mxu0 %vm2611_vm0, %v2609_v1 }
0x2101   :  { %2384 = vmatprep.subr.mxu0 %v2609_v1 }
0x2102   :  { %2385 = vmatpush3.msra.mxu0 %v2893_v14 }
0x2103   :  { %2386 = vmatprep.subr.mxu0 %v2609_v1 }
0x2104   :  { %2387 = vmatpush3.msra.mxu0 %v2896_v58 }
0x2105   :  { %2388 = vmatprep.subr.mxu0 %v2609_v1 }
0x2106   :  { %2389 = vmatpush3.msra.mxu0 %v2904_v6 }
0x2107   :  { %2404 = vmatprep.subr.mxu0 %v2609_v1 }
0x21bf   :  { %v1641_v48 = vpop.f32.mrf.mxu0 }
0x21c0   :  { %v1645_v49 = vadd.f32 %v1641_v48, %v2939_v25 }
0x21c1   :  { %v2370_v50 = vpop.f32.mrf.mxu0 }
0x21c2   :  { %v1646_v51 = vmul.f32 %v1645_v49, %v2750_v40 }
0x21c4   :  { %2477 = vtanh.f32 %v1646_v51 }
0x21d1   :  { %v2478_v52 = vpop.eup %2477 }
0x21d2   :  { %v1648_v53 = vmul.f32 %v2478_v52, %v2750_v40 }
0x21d4   :  { %v1649_v54 = vadd.f32 %v1648_v53, %v2754_v44 }
0x21d6   :  { %1655 = vrot.lane.b32.xlu1 %v1649_v54, %s2613_s3  ;;  %v1653_v57 = vmul.f32 %v1651_v56, %v1649_v54 }
0x2248   :  { %v1656_v38 = vpop.permute.xlu1 %1655 }
0x2249   :  { %v1658_v55 = vmul.f32 %v1656_v38, %v1649_v54 }
0x224b   :  { %1660 = vrot.lane.b32.xlu0 %v1658_v55, %s2605_s19 }
0x22bd   :  { %v1661_v59 = vpop.permute.xlu0 %1660 }
0x22be   :  { %v1663_v60 = vadd.f32 %v1661_v59, %v1653_v57  ;;  %v1988_v57 = vld [vmem:[%s3096_s7] sm:$0xff] }
0x22c0   :  { %2479 = vtanh.f32 %v1663_v60 }
0x22cd   :  { %v2480_v61 = vpop.eup %2479 }
0x22ce   :  { %1666 = vrot.lane.b32.xlu1 %v2480_v61, %s2613_s3 }
0x2340   :  { %v1667_v62 = vpop.permute.xlu1 %1666 }
0x2341   :  { %v1669_v63 = vmul.f32 %v1667_v62, %v1649_v54  ;;  %v1982_v62 = vrot.slane %v2918_v20, 6 }
0x2343   :  { %1671 = vrot.lane.b32.xlu0 %v1669_v63, %s2605_s19 }
0x23b5   :  { %v1672_v0 = vpop.permute.xlu0 %1671 }
0x23b6   :  { %2380 = vmatmul.mubr.msk.f32.vlgmr.msra.gmra.mxu1 %vm247_vm5, %v1672_v0 }
0x23b7   :  { %2394 = vmatpush3.msra.mxu1 %v2890_v13  ;;  %2401 = vmatprep.mubr.msk.f32.mxu1 %vm2611_vm0, %v2609_v1 }
0x23b8   :  { %2395 = vmatprep.subr.mxu1 %v2609_v1 }
0x23b9   :  { %2396 = vmatpush3.msra.mxu1 %v2893_v14 }
0x23ba   :  { %2397 = vmatprep.subr.mxu1 %v2609_v1 }
0x23bb   :  { %2398 = vmatpush3.msra.mxu1 %v2896_v58 }
0x23bc   :  { %2399 = vmatprep.subr.mxu1 %v2609_v1 }
0x23bd   :  { %2400 = vmatpush3.msra.mxu1 %v2904_v6  ;;  %v1754_v6 = vrot.slane %v1663_v60, 6 }
0x2476   :  { %v1741_v2 = vpop.f32.mrf.mxu1 }
0x2477   :  { %v1746_v3 = vrot.slane %v1741_v2, 6 }
0x2478   :  { %v2381_v4 = vpop.f32.mrf.mxu1 }
0x2479   :  { %v1748_v13 = vadd.f32 %v1746_v3, %v2939_v25 }
0x247b   :  { %v1749_v5 = vmul.f32 %v1748_v13, %v2750_v40 }
0x247d   :  { %2481 = vtanh.f32 %v1749_v5 }
0x248a   :  { %v2482_v7 = vpop.eup %2481 }
0x248b   :  { %v1751_v36 = vmul.f32 %v2482_v7, %v2750_v40 }
0x248d   :  { %v1752_v14 = vadd.f32 %v1751_v36, %v2754_v44 }
0x248f   :  { %1758 = vrot.lane.b32.xlu1 %v1752_v14, %s2613_s3  ;;  %v1756_v10 = vmul.f32 %v1754_v6, %v1752_v14 }
0x2501   :  { %v1759_v58 = vpop.permute.xlu1 %1758 }
0x2502   :  { %v1761_v9 = vmul.f32 %v1759_v58, %v1752_v14 }
0x2504   :  { %1763 = vrot.lane.b32.xlu0 %v1761_v9, %s2605_s19 }
0x2576   :  { %v1764_v11 = vpop.permute.xlu0 %1763 }
0x2577   :  { %v1766_v12 = vadd.f32 %v1764_v11, %v1756_v10 }
0x2579   :  { %2483 = vtanh.f32 %v1766_v12  ;;  %v1858_v32 = vrot.slane %v1766_v12, 6 }
0x2586   :  { %v2484_v15 = vpop.eup %2483 }
0x2587   :  { %1769 = vrot.lane.b32.xlu1 %v2484_v15, %s2613_s3 }
0x25f9   :  { %v1770_v17 = vpop.permute.xlu1 %1769 }
0x25fa   :  { %v1772_v18 = vmul.f32 %v1770_v17, %v1752_v14 }
0x25fc   :  { %v1774_v19 = vrot.slane %v1772_v18, 2 }
0x25fe   :  { %1775 = vrot.lane.b32.xlu0 %v1774_v19, %s2605_s19 }
0x2670   :  { %v1776_v21 = vpop.permute.xlu0 %1775 }
0x2671   :  { %2391 = vmatmul.mubr.msk.f32.vlgmr.msra.gmra.mxu0 %vm247_vm5, %v1776_v21 }
0x2672   :  { %2412 = vmatprep.mubr.msk.f32.mxu0 %vm2611_vm0, %v2609_v1 }
0x2731   :  { %v1845_v8 = vpop.f32.mrf.mxu0 }
0x2732   :  { %v1850_v22 = vrot.slane %v1845_v8, 4 }
0x2733   :  { %v2392_v16 = vpop.f32.mrf.mxu0 }
0x2734   :  { %v1852_v23 = vadd.f32 %v1850_v22, %v2939_v25 }
0x2736   :  { %v1853_v24 = vmul.f32 %v1852_v23, %v2750_v40 }
0x2738   :  { %2485 = vtanh.f32 %v1853_v24 }
0x2745   :  { %v2486_v26 = vpop.eup %2485 }
0x2746   :  { %v1855_v28 = vmul.f32 %v2486_v26, %v2750_v40 }
0x2748   :  { %v1856_v29 = vadd.f32 %v1855_v28, %v2754_v44 }
0x274a   :  { %1862 = vrot.lane.b32.xlu1 %v1856_v29, %s2613_s3  ;;  %v1860_v33 = vmul.f32 %v1858_v32, %v1856_v29 }
0x27bc   :  { %v1863_v30 = vpop.permute.xlu1 %1862 }
0x27bd   :  { %v1865_v31 = vmul.f32 %v1863_v30, %v1856_v29 }
0x27bf   :  { %1867 = vrot.lane.b32.xlu0 %v1865_v31, %s2605_s19 }
0x2831   :  { %v1868_v34 = vpop.permute.xlu0 %1867 }
0x2832   :  { %v1870_v35 = vadd.f32 %v1868_v34, %v1860_v33 }
0x2834   :  { %2487 = vtanh.f32 %v1870_v35  ;;  %v1962_v54 = vrot.slane %v1870_v35, 6 }
0x2841   :  { %v2488_v37 = vpop.eup %2487 }
0x2842   :  { %1873 = vrot.lane.b32.xlu1 %v2488_v37, %s2613_s3 }
0x28b4   :  { %v1874_v39 = vpop.permute.xlu1 %1873 }
0x28b5   :  { %v1876_v41 = vmul.f32 %v1874_v39, %v1856_v29 }
0x28b7   :  { %v1878_v42 = vrot.slane %v1876_v41, 4 }
0x28b9   :  { %1879 = vrot.lane.b32.xlu0 %v1878_v42, %s2605_s19 }
0x292b   :  { %v1880_v27 = vpop.permute.xlu0 %1879 }
0x292c   :  { %2402 = vmatmul.mubr.msk.f32.vlgmr.msra.gmra.mxu1 %vm247_vm5, %v1880_v27 }
0x29ec   :  { %v1949_v43 = vpop.f32.mrf.mxu1 }
0x29ed   :  { %v1954_v45 = vrot.slane %v1949_v43, 2 }
0x29ee   :  { %v2403_v46 = vpop.f32.mrf.mxu1 }
0x29ef   :  { %v1956_v47 = vadd.f32 %v1954_v45, %v2939_v25  ;;  %v1991_v25 = vld [vmem:[%s3096_s7 + $0x18] sm:$0xff] }
0x29f0   :  { %2405 = vmatpush3.msra.mxu0 %v1991_v25 }
0x29f1   :  { %v1957_v48 = vmul.f32 %v1956_v47, %v2750_v40  ;;  %2406 = vmatprep.subr.mxu0 %v2609_v1 }
0x29f3   :  { %2489 = vtanh.f32 %v1957_v48 }
0x2a00   :  { %v2490_v49 = vpop.eup %2489 }
0x2a01   :  { %v1959_v50 = vmul.f32 %v2490_v49, %v2750_v40  ;;  %v1990_v40 = vld [vmem:[%s3096_s7 + $0x10] sm:$0xff] }
0x2a02   :  { %2407 = vmatpush3.msra.mxu0 %v1990_v40 }
0x2a03   :  { %v1960_v51 = vadd.f32 %v1959_v50, %v2754_v44  ;;  %v1989_v44 = vld [vmem:[%s3096_s7 + $0x8] sm:$0xff]  ;;  %2408 = vmatprep.subr.mxu0 %v2609_v1 }
0x2a04   :  { %2409 = vmatpush3.msra.mxu0 %v1989_v44 }
0x2a05   :  { %1966 = vrot.lane.b32.xlu1 %v1960_v51, %s2613_s3  ;;  %v1964_v38 = vmul.f32 %v1962_v54, %v1960_v51  ;;  %2410 = vmatprep.subr.mxu0 %v2609_v1  ;;  %v2113_v1 = vld [vmem:[%s3097_s8] ss:$0 sm:$0xff] }
0x2a06   :  { %2411 = vmatpush3.msra.mxu0 %v1988_v57 }
0x2a77   :  { %v1967_v52 = vpop.permute.xlu1 %1966 }
0x2a78   :  { %v1969_v53 = vmul.f32 %v1967_v52, %v1960_v51 }
0x2a7a   :  { %1971 = vrot.lane.b32.xlu0 %v1969_v53, %s2605_s19 }
0x2aec   :  { %v1972_v55 = vpop.permute.xlu0 %1971 }
0x2aed   :  { %v1974_v56 = vadd.f32 %v1972_v55, %v1964_v38 }
0x2aef   :  { %2491 = vtanh.f32 %v1974_v56 }
0x2afc   :  { %v2492_v59 = vpop.eup %2491 }
0x2afd   :  { %1977 = vrot.lane.b32.xlu1 %v2492_v59, %s2613_s3 }
0x2b6f   :  { %v1978_v60 = vpop.permute.xlu1 %1977 }
0x2b70   :  { %v1980_v61 = vmul.f32 %v1978_v60, %v1960_v51 }
0x2b72   :  { %v1985_v63 = vrot.slane %v1980_v61, 4 }
0x2b74   :  { %v1987_v0 = vsel %vm1066_vm6, %v1982_v62, %v1985_v63 }
0x2b75   :  { %2000 = vrot.lane.b32.xlu0 %v1987_v0, %s2605_s19 }
0x2be7   :  { %v2001_v2 = vpop.permute.xlu0 %2000 }
0x2be8   :  { %2413 = vmatmul.mubr.msk.f32.vlgmr.msra.gmra.mxu0 %vm247_vm5, %v2001_v2 }
0x2ca8   :  { %v2070_v3 = vpop.f32.mrf.mxu0 }
0x2ca9   :  { %v2071_v4 = vadd.f32 %v2113_v1, %v2070_v3 }
0x2caa   :  { %v2414_v13 = vpop.f32.mrf.mxu0 }
0x2cab   :  { %2075 = vst.msk [vmem:[#allocation10] sm:$0xf] %vm2074_vm9, %v2071_v4 }
0x2cac   :  { %2584 = shalt.err (!%p2581_p10)
}
0x2cad   :  { %2085 = dma.vmem_to_hbm [thread:$0]  %s2083_s28, 64, %s3098_s9, [#allocation4]  }
0x2cae   :  { %2599 = dma.done.wait [#allocation4], 64  }
0x2caf   :  { %2600 = vsyncadd [#allocation4], 4294967232 }
0x2cb0   :  { %2089 = vsyncpa [#allocation3], 1 }
0x2cb1   :  { %2090 = vsyncpa [#allocation6], 1 }
0x2cb2   :  { %2091 = vsyncpa [#allocation9], 1 }
0x2cb3   :  { %2092 = vsyncpa [#allocation4], 1 }

</bundles_post_ra>
